<compile_context>
chip_gen: v7x
topology: tpu7x:2x2x1
jax: 0.10.0
libtpu: 0.0.40
codegen_flags: <defaults>
</compile_context>

<pallas_src>
import jax
import jax.numpy as jnp
from jax.experimental import pallas as pl
from jax.experimental.pallas import tpu as pltpu

EPS = 1e-6


def _round_up(a, m):
    return (a + m - 1) // m * m


def image_retrieval_net_forward(x_nchw, params, *, row_tile=1024):
    """Forward pass matching ImageRetrievalNet.forward; returns (out_dim, batch)."""
    B, C, H, W = x_nchw.shape
    wf, bf, wl, bl, p_gem, ww, bw = (params[k] for k in
                                     ("wf", "bf", "wl", "bl", "p", "ww", "bw"))
    K1, Cf = wf.shape
    assert K1 == 9 * C
    Dl = wl.shape[1]
    Dw = ww.shape[1]

    LANE = 128
    Cf_p = _round_up(Cf, LANE)
    Dl_p = _round_up(Dl, LANE)
    Dw_p = _round_up(Dw, LANE)

    TR = max(16, (row_tile // 16) * 16)          # rows (spatial positions) per grid step
    Wp = _round_up(W + 2, 16)                    # padded width (16-aligned row stride)
    Q = _round_up(H * Wp, TR)                    # flat padded positions covered by the grid
    nt = Q // TR
    N_rows = Q + 2 * Wp                          # rows each shifted copy must expose
    HW = H * W

    # ---- host-side parameter prep: lane-dense padding, bf16 for MXU weights ----
    wf_p = (jnp.zeros((9, C, Cf_p), jnp.float32)
            .at[:, :, :Cf].set(wf.reshape(9, C, Cf)).astype(jnp.bfloat16))
    bf_p = jnp.zeros((1, Cf_p), jnp.float32).at[:, :Cf].set(bf.reshape(1, Cf))
    wl_p = (jnp.zeros((Cf_p, Dl_p), jnp.float32)
            .at[:Cf, :Dl].set(wl).astype(jnp.bfloat16))
    bl_p = jnp.zeros((1, Dl_p), jnp.float32).at[:, :Dl].set(bl.reshape(1, Dl))
    ww_p = jnp.zeros((Dl_p, Dw_p), jnp.float32).at[:Dl, :Dw].set(ww)
    bw_p = jnp.zeros((1, Dw_p), jnp.float32).at[:, :Dw].set(bw.reshape(1, Dw))
    p_vec = jnp.broadcast_to(p_gem.astype(jnp.float32), (1, Dl_p))  # GeM power, lane-broadcast

    # ---- host-side input prep: zero-pad spatially, flatten rows, 3 dx-shifted copies ----
    x_nhwc = jnp.transpose(x_nchw, (0, 2, 3, 1))                     # NCHW -> NHWC
    x_pad = jnp.pad(x_nhwc, ((0, 0), (1, 1), (1, Wp - W - 1), (0, 0)))   # (B, H+2, Wp, C)
    x_flat = x_pad.reshape(B, (H + 2) * Wp, C)
    x_flat = jnp.pad(x_flat, ((0, 0), (0, N_rows + 2 - (H + 2) * Wp), (0, 0)))
    x_flat = x_flat.astype(jnp.bfloat16)
    # (B, 3, N_rows, C): copy d is the flat image shifted by d rows -> all kernel loads are aligned.
    x_sh = jnp.stack([x_flat[:, d:d + N_rows, :] for d in range(3)], axis=1)

    # spatial validity mask over grid rows: flat position q is valid iff its conv
    # center (q + Wp + 1) is an interior pixel of the padded image.
    q = jnp.arange(Q, dtype=jnp.int32)
    center = q + (Wp + 1)
    yy = center // Wp
    xx = center - yy * Wp
    mask = (((yy >= 1) & (yy <= H) & (xx >= 1) & (xx <= W))
            .astype(jnp.float32))[:, None]                           # (Q, 1)

    # ------------------------------------------------------------------
    # Kernel 1: conv3x3 (9 shifted matmuls) + bias + ReLU + lwhiten Linear
    #           + GeM partial sums, accumulated across the spatial grid axis.
    # ------------------------------------------------------------------
    def feat_lwhiten_gem_kernel(p_ref, mask_ref, x_ref, wf_ref, bf_ref,
                                wl_ref, bl_ref, gem_ref):
        t = pl.program_id(1)
        row0 = pl.multiple_of(t * TR, 16)
        acc = None
        for dy in range(3):
            for dx in range(3):
                lhs = x_ref[0, dx, pl.ds(row0 + dy * Wp, TR), :]     # (TR, C) bf16, aligned
                contrib = jnp.dot(lhs, wf_ref[dy * 3 + dx],
                                  preferred_element_type=jnp.float32)
                acc = contrib if acc is None else acc + contrib
        h = jnp.maximum(acc + bf_ref[...], 0.0)                      # conv bias + ReLU (f32)
        o = jnp.dot(h.astype(jnp.bfloat16), wl_ref[...],
                    preferred_element_type=jnp.float32) + bl_ref[...]  # local whitening
        xp = jnp.exp(p_ref[...] * jnp.log(jnp.maximum(o, EPS)))      # clamp(min=eps) ** p
        xp = xp * mask_ref[...]                                      # drop border / pad rows
        part = jnp.sum(xp.reshape(TR // 8, 8, Dl_p), axis=0)         # (8, Dl_p) partial GeM sums

        @pl.when(t == 0)
        def _init():
            gem_ref[...] = jnp.zeros_like(gem_ref)

        gem_ref[...] += part[None]

    gem_sums = pl.pallas_call(
        feat_lwhiten_gem_kernel,
        out_shape=jax.ShapeDtypeStruct((B, 8, Dl_p), jnp.float32),
        grid=(B, nt),
        in_specs=[
            pl.BlockSpec((1, Dl_p), lambda b, t: (0, 0)),            # GeM power (broadcast)
            pl.BlockSpec((TR, 1), lambda b, t: (t, 0)),              # validity mask tile
            pl.BlockSpec((1, 3, N_rows, C), lambda b, t: (b, 0, 0, 0)),  # per-batch image (resident)
            pl.BlockSpec((9, C, Cf_p), lambda b, t: (0, 0, 0)),      # conv weights (resident)
            pl.BlockSpec((1, Cf_p), lambda b, t: (0, 0)),            # conv bias
            pl.BlockSpec((Cf_p, Dl_p), lambda b, t: (0, 0)),         # lwhiten weight (resident)
            pl.BlockSpec((1, Dl_p), lambda b, t: (0, 0)),            # lwhiten bias
        ],
        out_specs=pl.BlockSpec((1, 8, Dl_p), lambda b, t: (b, 0, 0)),
        compiler_params=pltpu.CompilerParams(
            dimension_semantics=("parallel", "arbitrary"),
            vmem_limit_bytes=64 * 1024 * 1024,
        ),
    )(p_vec, mask, x_sh, wf_p, bf_p, wl_p, bl_p)

    # ------------------------------------------------------------------
    # Kernel 2: tiny finalize — GeM ^(1/p), L2N, whitening Linear, L2N.
    # ------------------------------------------------------------------
    def gem_whiten_kernel(p_ref, gem_ref, ww_ref, bw_ref, out_ref):
        s = jnp.sum(gem_ref[...], axis=1)                            # (B, Dl_p)
        pooled = jnp.exp(jnp.log(s * (1.0 / HW)) / p_ref[...])       # (mean x^p) ** (1/p)
        col = jax.lax.broadcasted_iota(jnp.int32, pooled.shape, 1)
        pooled = jnp.where(col < Dl, pooled, 0.0)                    # drop lane-padding columns
        n1 = jnp.sqrt(jnp.sum(pooled * pooled, axis=1, keepdims=True))
        pooled = pooled / (n1 + EPS)                                 # L2N
        w = jnp.dot(pooled, ww_ref[...],
                    preferred_element_type=jnp.float32) + bw_ref[...]
        n2 = jnp.sqrt(jnp.sum(w * w, axis=1, keepdims=True))
        out_ref[...] = w / (n2 + EPS)                                # L2N

    pooled_whitened = pl.pallas_call(
        gem_whiten_kernel,
        out_shape=jax.ShapeDtypeStruct((B, Dw_p), jnp.float32),
        in_specs=[pl.BlockSpec(memory_space=pltpu.MemorySpace.VMEM)] * 4,
        out_specs=pl.BlockSpec(memory_space=pltpu.MemorySpace.VMEM),
    )(p_vec, gem_sums, ww_p, bw_p)

    return jnp.transpose(pooled_whitened[:, :Dw], (1, 0))            # o.permute(1, 0) -> (Dw, B)


# Pure-JAX reference (module semantics; mirrors the kernel's bf16 MXU operand rounding).
def reference_forward(x_nchw, params):
    wf, bf, wl, bl, p_gem, ww, bw = (params[k] for k in
                                     ("wf", "bf", "wl", "bl", "p", "ww", "bw"))
    B, C, H, W = x_nchw.shape
    x_nhwc = jnp.transpose(x_nchw, (0, 2, 3, 1))
    xpad = jnp.pad(x_nhwc, ((0, 0), (1, 1), (1, 1), (0, 0)))
    cols = [xpad[:, dy:dy + H, dx:dx + W, :] for dy in range(3) for dx in range(3)]
    patches = jnp.concatenate(cols, axis=-1).reshape(B * H * W, 9 * C)
    f32 = jnp.float32
    pb = patches.astype(jnp.bfloat16).astype(f32)
    wfb = wf.astype(jnp.bfloat16).astype(f32)
    wlb = wl.astype(jnp.bfloat16).astype(f32)
    h = jnp.maximum(pb @ wfb + bf, 0.0)
    o = h.astype(jnp.bfloat16).astype(f32) @ wlb + bl
    o = o.reshape(B, H * W, -1)
    p = p_gem[0]
    xc = jnp.maximum(o, EPS)
    pooled = jnp.exp(jnp.log(jnp.mean(jnp.exp(p * jnp.log(xc)), axis=1)) / p)
    pooled = pooled / (jnp.sqrt(jnp.sum(pooled ** 2, axis=1, keepdims=True)) + EPS)
    w = pooled @ ww + bw
    w = w / (jnp.sqrt(jnp.sum(w ** 2, axis=1, keepdims=True)) + EPS)
    return w.T


if __name__ == "__main__":
    B, C, H, W = 2, 4, 16, 16
    Cf, Dl, Dw = 32, 32, 32
    K1 = 9 * C

    key = jax.random.PRNGKey(0)
    ks = jax.random.split(key, 8)
    params = {
        # features: Conv2d(C, Cf, 3, padding=1) weights in (ky, kx, cin) x cout layout -> (9*C, Cf)
        "wf": jax.random.normal(ks[0], (K1, Cf), jnp.float32) * 0.1,
        "bf": jax.random.normal(ks[1], (1, Cf), jnp.float32) * 0.01,
        # lwhiten: Linear(Cf, Dl)
        "wl": jax.random.normal(ks[2], (Cf, Dl), jnp.float32) * 0.1,
        "bl": jax.random.normal(ks[3], (1, Dl), jnp.float32) * 0.01,
        # GeM power Parameter(torch.ones(1) * 3)
        "p": jnp.ones((1,), jnp.float32) * 3.0,
        # whiten: Linear(Dl, Dw)
        "ww": jax.random.normal(ks[4], (Dl, Dw), jnp.float32) * 0.1,
        "bw": jax.random.normal(ks[5], (1, Dw), jnp.float32) * 0.01,
    }
    x = jax.random.normal(ks[6], (B, C, H, W), jnp.float32)

    ref = jax.block_until_ready(reference_forward(x, params))

    # row_tile=128 only to exercise the multi-step GeM accumulation at this toy size;
    # the default (1024) is the right setting for real image resolutions.
    out = jax.block_until_ready(image_retrieval_net_forward(x, params, row_tile=128))
    assert out.shape == (Dw, B), out.shape
    assert jnp.allclose(out, ref, rtol=1e-3, atol=1e-4), float(jnp.max(jnp.abs(out - ref)))

    out_big = jax.block_until_ready(image_retrieval_net_forward(x, params))  # default row_tile
    assert jnp.allclose(out_big, ref, rtol=1e-3, atol=1e-4), float(jnp.max(jnp.abs(out_big - ref)))

    print("KERNEL_OK")
</pallas_src>

<mosaic_0001>
module attributes {stable_mosaic.version = 11 : i64} {
  func.func @feat_lwhiten_gem_kernel(%arg0: i32, %arg1: i32, %arg2: memref<1x128xf32, #tpu.memory_space<vmem>>, %arg3: memref<128x1xf32, #tpu.memory_space<vmem>>, %arg4: memref<1x3x576x4xbf16, #tpu.memory_space<vmem>>, %arg5: memref<9x4x128xbf16, #tpu.memory_space<vmem>>, %arg6: memref<1x128xf32, #tpu.memory_space<vmem>>, %arg7: memref<128x128xbf16, #tpu.memory_space<vmem>>, %arg8: memref<1x128xf32, #tpu.memory_space<vmem>>, %arg9: memref<1x8x128xf32, #tpu.memory_space<vmem>>) attributes {dimension_semantics = [#tpu.dimension_semantics<parallel>, #tpu.dimension_semantics<arbitrary>], iteration_bounds = array<i64: 2, 4>, scalar_prefetch = 0 : i64, scratch_operands = 0 : i64, tpu.core_type = #tpu.core_type<tc>, window_params = [{pipeline_mode = #tpu.pipeline_mode<synchronous>, transform_indices = @transform_0, window_bounds = array<i64: 1, 128>}, {transform_indices = @transform_1, window_bounds = array<i64: 128, 1>}, {transform_indices = @transform_2, window_bounds = array<i64: 1, 3, 576, 4>}, {pipeline_mode = #tpu.pipeline_mode<synchronous>, transform_indices = @transform_3, window_bounds = array<i64: 9, 4, 128>}, {pipeline_mode = #tpu.pipeline_mode<synchronous>, transform_indices = @transform_4, window_bounds = array<i64: 1, 128>}, {pipeline_mode = #tpu.pipeline_mode<synchronous>, transform_indices = @transform_5, window_bounds = array<i64: 128, 128>}, {pipeline_mode = #tpu.pipeline_mode<synchronous>, transform_indices = @transform_6, window_bounds = array<i64: 1, 128>}, {transform_indices = @transform_7, window_bounds = array<i64: 1, 8, 128>}]} {
    %c128_i32 = arith.constant 128 : i32
    %0 = arith.muli %arg1, %c128_i32 : i32
    %1 = tpu.assume_multiple %0, 16 : i32
    %c0_i32 = arith.constant 0 : i32
    %2 = arith.addi %1, %c0_i32 : i32
    %c0 = arith.constant 0 : index
    %c0_0 = arith.constant 0 : index
    %3 = arith.index_cast %2 : i32 to index
    %c0_1 = arith.constant 0 : index
    %4 = vector.load %arg4[%c0, %c0_0, %3, %c0_1] : memref<1x3x576x4xbf16, #tpu.memory_space<vmem>>, vector<1x1x128x4xbf16>
    %5 = vector.shape_cast %4 : vector<1x1x128x4xbf16> to vector<128x4xbf16>
    %c0_2 = arith.constant 0 : index
    %c0_3 = arith.constant 0 : index
    %c0_4 = arith.constant 0 : index
    %6 = vector.load %arg5[%c0_2, %c0_3, %c0_4] : memref<9x4x128xbf16, #tpu.memory_space<vmem>>, vector<1x4x128xbf16>
    %7 = vector.shape_cast %6 : vector<1x4x128xbf16> to vector<4x128xbf16>
    %cst = arith.constant dense<0.000000e+00> : vector<128x128xf32>
    %8 = tpu.matmul %5, %7, %cst {dimension_numbers = #tpu.dot_dimension_numbers<[1], [0], [0], [1], [0, 0, 1, 1], [], []>} : vector<128x4xbf16>, vector<4x128xbf16>, vector<128x128xf32> -> vector<128x128xf32>
    %c0_i32_5 = arith.constant 0 : i32
    %9 = arith.addi %1, %c0_i32_5 : i32
    %c0_6 = arith.constant 0 : index
    %c1 = arith.constant 1 : index
    %10 = arith.index_cast %9 : i32 to index
    %c0_7 = arith.constant 0 : index
    %11 = vector.load %arg4[%c0_6, %c1, %10, %c0_7] : memref<1x3x576x4xbf16, #tpu.memory_space<vmem>>, vector<1x1x128x4xbf16>
    %12 = vector.shape_cast %11 : vector<1x1x128x4xbf16> to vector<128x4xbf16>
    %c1_8 = arith.constant 1 : index
    %c0_9 = arith.constant 0 : index
    %c0_10 = arith.constant 0 : index
    %13 = vector.load %arg5[%c1_8, %c0_9, %c0_10] : memref<9x4x128xbf16, #tpu.memory_space<vmem>>, vector<1x4x128xbf16>
    %14 = vector.shape_cast %13 : vector<1x4x128xbf16> to vector<4x128xbf16>
    %cst_11 = arith.constant dense<0.000000e+00> : vector<128x128xf32>
    %15 = tpu.matmul %12, %14, %cst_11 {dimension_numbers = #tpu.dot_dimension_numbers<[1], [0], [0], [1], [0, 0, 1, 1], [], []>} : vector<128x4xbf16>, vector<4x128xbf16>, vector<128x128xf32> -> vector<128x128xf32>
    %16 = arith.addf %8, %15 : vector<128x128xf32>
    %c0_i32_12 = arith.constant 0 : i32
    %17 = arith.addi %1, %c0_i32_12 : i32
    %c0_13 = arith.constant 0 : index
    %c2 = arith.constant 2 : index
    %18 = arith.index_cast %17 : i32 to index
    %c0_14 = arith.constant 0 : index
    %19 = vector.load %arg4[%c0_13, %c2, %18, %c0_14] : memref<1x3x576x4xbf16, #tpu.memory_space<vmem>>, vector<1x1x128x4xbf16>
    %20 = vector.shape_cast %19 : vector<1x1x128x4xbf16> to vector<128x4xbf16>
    %c2_15 = arith.constant 2 : index
    %c0_16 = arith.constant 0 : index
    %c0_17 = arith.constant 0 : index
    %21 = vector.load %arg5[%c2_15, %c0_16, %c0_17] : memref<9x4x128xbf16, #tpu.memory_space<vmem>>, vector<1x4x128xbf16>
    %22 = vector.shape_cast %21 : vector<1x4x128xbf16> to vector<4x128xbf16>
    %cst_18 = arith.constant dense<0.000000e+00> : vector<128x128xf32>
    %23 = tpu.matmul %20, %22, %cst_18 {dimension_numbers = #tpu.dot_dimension_numbers<[1], [0], [0], [1], [0, 0, 1, 1], [], []>} : vector<128x4xbf16>, vector<4x128xbf16>, vector<128x128xf32> -> vector<128x128xf32>
    %24 = arith.addf %16, %23 : vector<128x128xf32>
    %c32_i32 = arith.constant 32 : i32
    %25 = arith.addi %1, %c32_i32 : i32
    %c0_19 = arith.constant 0 : index
    %c0_20 = arith.constant 0 : index
    %26 = arith.index_cast %25 : i32 to index
    %c0_21 = arith.constant 0 : index
    %27 = vector.load %arg4[%c0_19, %c0_20, %26, %c0_21] : memref<1x3x576x4xbf16, #tpu.memory_space<vmem>>, vector<1x1x128x4xbf16>
    %28 = vector.shape_cast %27 : vector<1x1x128x4xbf16> to vector<128x4xbf16>
    %c3 = arith.constant 3 : index
    %c0_22 = arith.constant 0 : index
    %c0_23 = arith.constant 0 : index
    %29 = vector.load %arg5[%c3, %c0_22, %c0_23] : memref<9x4x128xbf16, #tpu.memory_space<vmem>>, vector<1x4x128xbf16>
    %30 = vector.shape_cast %29 : vector<1x4x128xbf16> to vector<4x128xbf16>
    %cst_24 = arith.constant dense<0.000000e+00> : vector<128x128xf32>
    %31 = tpu.matmul %28, %30, %cst_24 {dimension_numbers = #tpu.dot_dimension_numbers<[1], [0], [0], [1], [0, 0, 1, 1], [], []>} : vector<128x4xbf16>, vector<4x128xbf16>, vector<128x128xf32> -> vector<128x128xf32>
    %32 = arith.addf %24, %31 : vector<128x128xf32>
    %c32_i32_25 = arith.constant 32 : i32
    %33 = arith.addi %1, %c32_i32_25 : i32
    %c0_26 = arith.constant 0 : index
    %c1_27 = arith.constant 1 : index
    %34 = arith.index_cast %33 : i32 to index
    %c0_28 = arith.constant 0 : index
    %35 = vector.load %arg4[%c0_26, %c1_27, %34, %c0_28] : memref<1x3x576x4xbf16, #tpu.memory_space<vmem>>, vector<1x1x128x4xbf16>
    %36 = vector.shape_cast %35 : vector<1x1x128x4xbf16> to vector<128x4xbf16>
    %c4 = arith.constant 4 : index
    %c0_29 = arith.constant 0 : index
    %c0_30 = arith.constant 0 : index
    %37 = vector.load %arg5[%c4, %c0_29, %c0_30] : memref<9x4x128xbf16, #tpu.memory_space<vmem>>, vector<1x4x128xbf16>
    %38 = vector.shape_cast %37 : vector<1x4x128xbf16> to vector<4x128xbf16>
    %cst_31 = arith.constant dense<0.000000e+00> : vector<128x128xf32>
    %39 = tpu.matmul %36, %38, %cst_31 {dimension_numbers = #tpu.dot_dimension_numbers<[1], [0], [0], [1], [0, 0, 1, 1], [], []>} : vector<128x4xbf16>, vector<4x128xbf16>, vector<128x128xf32> -> vector<128x128xf32>
    %40 = arith.addf %32, %39 : vector<128x128xf32>
    %c32_i32_32 = arith.constant 32 : i32
    %41 = arith.addi %1, %c32_i32_32 : i32
    %c0_33 = arith.constant 0 : index
    %c2_34 = arith.constant 2 : index
    %42 = arith.index_cast %41 : i32 to index
    %c0_35 = arith.constant 0 : index
    %43 = vector.load %arg4[%c0_33, %c2_34, %42, %c0_35] : memref<1x3x576x4xbf16, #tpu.memory_space<vmem>>, vector<1x1x128x4xbf16>
    %44 = vector.shape_cast %43 : vector<1x1x128x4xbf16> to vector<128x4xbf16>
    %c5 = arith.constant 5 : index
    %c0_36 = arith.constant 0 : index
    %c0_37 = arith.constant 0 : index
    %45 = vector.load %arg5[%c5, %c0_36, %c0_37] : memref<9x4x128xbf16, #tpu.memory_space<vmem>>, vector<1x4x128xbf16>
    %46 = vector.shape_cast %45 : vector<1x4x128xbf16> to vector<4x128xbf16>
    %cst_38 = arith.constant dense<0.000000e+00> : vector<128x128xf32>
    %47 = tpu.matmul %44, %46, %cst_38 {dimension_numbers = #tpu.dot_dimension_numbers<[1], [0], [0], [1], [0, 0, 1, 1], [], []>} : vector<128x4xbf16>, vector<4x128xbf16>, vector<128x128xf32> -> vector<128x128xf32>
    %48 = arith.addf %40, %47 : vector<128x128xf32>
    %c64_i32 = arith.constant 64 : i32
    %49 = arith.addi %1, %c64_i32 : i32
    %c0_39 = arith.constant 0 : index
    %c0_40 = arith.constant 0 : index
    %50 = arith.index_cast %49 : i32 to index
    %c0_41 = arith.constant 0 : index
    %51 = vector.load %arg4[%c0_39, %c0_40, %50, %c0_41] : memref<1x3x576x4xbf16, #tpu.memory_space<vmem>>, vector<1x1x128x4xbf16>
    %52 = vector.shape_cast %51 : vector<1x1x128x4xbf16> to vector<128x4xbf16>
    %c6 = arith.constant 6 : index
    %c0_42 = arith.constant 0 : index
    %c0_43 = arith.constant 0 : index
    %53 = vector.load %arg5[%c6, %c0_42, %c0_43] : memref<9x4x128xbf16, #tpu.memory_space<vmem>>, vector<1x4x128xbf16>
    %54 = vector.shape_cast %53 : vector<1x4x128xbf16> to vector<4x128xbf16>
    %cst_44 = arith.constant dense<0.000000e+00> : vector<128x128xf32>
    %55 = tpu.matmul %52, %54, %cst_44 {dimension_numbers = #tpu.dot_dimension_numbers<[1], [0], [0], [1], [0, 0, 1, 1], [], []>} : vector<128x4xbf16>, vector<4x128xbf16>, vector<128x128xf32> -> vector<128x128xf32>
    %56 = arith.addf %48, %55 : vector<128x128xf32>
    %c64_i32_45 = arith.constant 64 : i32
    %57 = arith.addi %1, %c64_i32_45 : i32
    %c0_46 = arith.constant 0 : index
    %c1_47 = arith.constant 1 : index
    %58 = arith.index_cast %57 : i32 to index
    %c0_48 = arith.constant 0 : index
    %59 = vector.load %arg4[%c0_46, %c1_47, %58, %c0_48] : memref<1x3x576x4xbf16, #tpu.memory_space<vmem>>, vector<1x1x128x4xbf16>
    %60 = vector.shape_cast %59 : vector<1x1x128x4xbf16> to vector<128x4xbf16>
    %c7 = arith.constant 7 : index
    %c0_49 = arith.constant 0 : index
    %c0_50 = arith.constant 0 : index
    %61 = vector.load %arg5[%c7, %c0_49, %c0_50] : memref<9x4x128xbf16, #tpu.memory_space<vmem>>, vector<1x4x128xbf16>
    %62 = vector.shape_cast %61 : vector<1x4x128xbf16> to vector<4x128xbf16>
    %cst_51 = arith.constant dense<0.000000e+00> : vector<128x128xf32>
    %63 = tpu.matmul %60, %62, %cst_51 {dimension_numbers = #tpu.dot_dimension_numbers<[1], [0], [0], [1], [0, 0, 1, 1], [], []>} : vector<128x4xbf16>, vector<4x128xbf16>, vector<128x128xf32> -> vector<128x128xf32>
    %64 = arith.addf %56, %63 : vector<128x128xf32>
    %c64_i32_52 = arith.constant 64 : i32
    %65 = arith.addi %1, %c64_i32_52 : i32
    %c0_53 = arith.constant 0 : index
    %c2_54 = arith.constant 2 : index
    %66 = arith.index_cast %65 : i32 to index
    %c0_55 = arith.constant 0 : index
    %67 = vector.load %arg4[%c0_53, %c2_54, %66, %c0_55] : memref<1x3x576x4xbf16, #tpu.memory_space<vmem>>, vector<1x1x128x4xbf16>
    %68 = vector.shape_cast %67 : vector<1x1x128x4xbf16> to vector<128x4xbf16>
    %c8 = arith.constant 8 : index
    %c0_56 = arith.constant 0 : index
    %c0_57 = arith.constant 0 : index
    %69 = vector.load %arg5[%c8, %c0_56, %c0_57] : memref<9x4x128xbf16, #tpu.memory_space<vmem>>, vector<1x4x128xbf16>
    %70 = vector.shape_cast %69 : vector<1x4x128xbf16> to vector<4x128xbf16>
    %cst_58 = arith.constant dense<0.000000e+00> : vector<128x128xf32>
    %71 = tpu.matmul %68, %70, %cst_58 {dimension_numbers = #tpu.dot_dimension_numbers<[1], [0], [0], [1], [0, 0, 1, 1], [], []>} : vector<128x4xbf16>, vector<4x128xbf16>, vector<128x128xf32> -> vector<128x128xf32>
    %72 = arith.addf %64, %71 : vector<128x128xf32>
    %c0_59 = arith.constant 0 : index
    %c0_60 = arith.constant 0 : index
    %73 = vector.load %arg6[%c0_59, %c0_60] : memref<1x128xf32, #tpu.memory_space<vmem>>, vector<1x128xf32>
    %74 = vector.broadcast %73 : vector<1x128xf32> to vector<128x128xf32>
    %75 = arith.addf %72, %74 : vector<128x128xf32>
    %cst_61 = arith.constant 0.000000e+00 : f32
    %76 = vector.broadcast %cst_61 : f32 to vector<128x128xf32>
    %77 = arith.maximumf %75, %76 : vector<128x128xf32>
    %78 = arith.truncf %77 : vector<128x128xf32> to vector<128x128xbf16>
    %c0_62 = arith.constant 0 : index
    %c0_63 = arith.constant 0 : index
    %79 = vector.load %arg7[%c0_62, %c0_63] : memref<128x128xbf16, #tpu.memory_space<vmem>>, vector<128x128xbf16>
    %cst_64 = arith.constant dense<0.000000e+00> : vector<128x128xf32>
    %80 = tpu.matmul %78, %79, %cst_64 {dimension_numbers = #tpu.dot_dimension_numbers<[1], [0], [0], [1], [0, 0, 1, 1], [], []>} : vector<128x128xbf16>, vector<128x128xbf16>, vector<128x128xf32> -> vector<128x128xf32>
    %c0_65 = arith.constant 0 : index
    %c0_66 = arith.constant 0 : index
    %81 = vector.load %arg8[%c0_65, %c0_66] : memref<1x128xf32, #tpu.memory_space<vmem>>, vector<1x128xf32>
    %82 = vector.broadcast %81 : vector<1x128xf32> to vector<128x128xf32>
    %83 = arith.addf %80, %82 : vector<128x128xf32>
    %c0_67 = arith.constant 0 : index
    %c0_68 = arith.constant 0 : index
    %84 = vector.load %arg2[%c0_67, %c0_68] : memref<1x128xf32, #tpu.memory_space<vmem>>, vector<1x128xf32>
    %cst_69 = arith.constant 9.99999997E-7 : f32
    %85 = vector.broadcast %cst_69 : f32 to vector<128x128xf32>
    %86 = arith.maximumf %83, %85 : vector<128x128xf32>
    %87 = math.log %86 : vector<128x128xf32>
    %88 = vector.broadcast %84 : vector<1x128xf32> to vector<128x128xf32>
    %89 = arith.mulf %88, %87 : vector<128x128xf32>
    %90 = math.exp %89 : vector<128x128xf32>
    %c0_70 = arith.constant 0 : index
    %c0_71 = arith.constant 0 : index
    %91 = vector.load %arg3[%c0_70, %c0_71] : memref<128x1xf32, #tpu.memory_space<vmem>>, vector<128x1xf32>
    %92 = vector.broadcast %91 : vector<128x1xf32> to vector<128x128xf32>
    %93 = arith.mulf %90, %92 : vector<128x128xf32>
    %94 = vector.shape_cast %93 : vector<128x128xf32> to vector<16x8x128xf32>
    %cst_72 = arith.constant dense<0.000000e+00> : vector<8x128xf32>
    %95 = vector.multi_reduction <add>, %94, %cst_72 [0] : vector<16x8x128xf32> to vector<8x128xf32>
    %c0_i32_73 = arith.constant 0 : i32
    %96 = arith.cmpi eq, %arg1, %c0_i32_73 : i32
    %97 = arith.extui %96 : i1 to i32
    %c0_i32_74 = arith.constant 0 : i32
    %98 = arith.cmpi ne, %97, %c0_i32_74 : i32
    scf.if %98 {
      %cst_81 = arith.constant 0.000000e+00 : f32
      %103 = vector.broadcast %cst_81 : f32 to vector<1x8x128xf32>
      %c0_82 = arith.constant 0 : index
      %c0_83 = arith.constant 0 : index
      %c0_84 = arith.constant 0 : index
      %104 = vector.load %arg9[%c0_82, %c0_83, %c0_84] : memref<1x8x128xf32, #tpu.memory_space<vmem>>, vector<1x8x128xf32>
      tpu.vector_store %arg9[%c0_82, %c0_83, %c0_84], %103 {strides = array<i32>} : memref<1x8x128xf32, #tpu.memory_space<vmem>>, vector<1x8x128xf32>,
    } else {
    }
    %c0_75 = arith.constant 0 : index
    %c0_76 = arith.constant 0 : index
    %c0_77 = arith.constant 0 : index
    %99 = vector.load %arg9[%c0_75, %c0_76, %c0_77] : memref<1x8x128xf32, #tpu.memory_space<vmem>>, vector<1x8x128xf32>
    %100 = vector.shape_cast %95 : vector<8x128xf32> to vector<1x8x128xf32>
    %101 = arith.addf %99, %100 : vector<1x8x128xf32>
    %c0_78 = arith.constant 0 : index
    %c0_79 = arith.constant 0 : index
    %c0_80 = arith.constant 0 : index
    %102 = vector.load %arg9[%c0_78, %c0_79, %c0_80] : memref<1x8x128xf32, #tpu.memory_space<vmem>>, vector<1x8x128xf32>
    tpu.vector_store %arg9[%c0_78, %c0_79, %c0_80], %101 {strides = array<i32>} : memref<1x8x128xf32, #tpu.memory_space<vmem>>, vector<1x8x128xf32>,
    return
  }
  func.func @transform_0(%arg0: i32, %arg1: i32) -> (i32, i32) {
    %c0_i32 = arith.constant 0 : i32
    %c0_i32_0 = arith.constant 0 : i32
    %c0_i32_1 = arith.constant 0 : i32
    return %c0_i32, %c0_i32_0 : i32, i32
  }
  func.func @transform_1(%arg0: i32, %arg1: i32) -> (i32, i32) {
    %c0_i32 = arith.constant 0 : i32
    %c0_i32_0 = arith.constant 0 : i32
    return %arg1, %c0_i32 : i32, i32
  }
  func.func @transform_2(%arg0: i32, %arg1: i32) -> (i32, i32, i32, i32) {
    %c0_i32 = arith.constant 0 : i32
    %c0_i32_0 = arith.constant 0 : i32
    %c0_i32_1 = arith.constant 0 : i32
    %c0_i32_2 = arith.constant 0 : i32
    return %arg0, %c0_i32, %c0_i32_0, %c0_i32_1 : i32, i32, i32, i32
  }
  func.func @transform_3(%arg0: i32, %arg1: i32) -> (i32, i32, i32) {
    %c0_i32 = arith.constant 0 : i32
    %c0_i32_0 = arith.constant 0 : i32
    %c0_i32_1 = arith.constant 0 : i32
    %c0_i32_2 = arith.constant 0 : i32
    return %c0_i32, %c0_i32_0, %c0_i32_1 : i32, i32, i32
  }
  func.func @transform_4(%arg0: i32, %arg1: i32) -> (i32, i32) {
    %c0_i32 = arith.constant 0 : i32
    %c0_i32_0 = arith.constant 0 : i32
    %c0_i32_1 = arith.constant 0 : i32
    return %c0_i32, %c0_i32_0 : i32, i32
  }
  func.func @transform_5(%arg0: i32, %arg1: i32) -> (i32, i32) {
    %c0_i32 = arith.constant 0 : i32
    %c0_i32_0 = arith.constant 0 : i32
    %c0_i32_1 = arith.constant 0 : i32
    return %c0_i32, %c0_i32_0 : i32, i32
  }
  func.func @transform_6(%arg0: i32, %arg1: i32) -> (i32, i32) {
    %c0_i32 = arith.constant 0 : i32
    %c0_i32_0 = arith.constant 0 : i32
    %c0_i32_1 = arith.constant 0 : i32
    return %c0_i32, %c0_i32_0 : i32, i32
  }
  func.func @transform_7(%arg0: i32, %arg1: i32) -> (i32, i32, i32) {
    %c0_i32 = arith.constant 0 : i32
    %c0_i32_0 = arith.constant 0 : i32
    %c0_i32_1 = arith.constant 0 : i32
    return %arg0, %c0_i32, %c0_i32_0 : i32, i32, i32
  }
}

</mosaic_0001>

<bundles_post_ra>
// kernel: tpu_custom_call.1
= control target key start
LH: loop header
LB: loop body
LE: loop exit
PB: predicated region body
PF: predicated region fallthrough
CT: control target
= control target key end

     0   :  { %s4978_s0 = inlined_call_operand.hbm [shape: f32[1,128], index: 0, kind: input, shape index: {}]   ;;  %s4979_s1 = inlined_call_operand.hbm [shape: f32[512,1], index: 1, kind: input, shape index: {}]   ;;  %s4980_s2 = inlined_call_operand.hbm [shape: bf16[2,3,576,4], index: 2, kind: input, shape index: {}]   ;;  %s4981_s3 = inlined_call_operand.hbm [shape: bf16[9,4,128], index: 3, kind: input, shape index: {}]   ;;  %s4982_s4 = inlined_call_operand.hbm [shape: f32[1,128], index: 4, kind: input, shape index: {}]   ;;  %s4983_s5 = inlined_call_operand.hbm [shape: bf16[128,128], index: 5, kind: input, shape index: {}]   ;;  %s4984_s6 = inlined_call_operand.hbm [shape: f32[1,128], index: 6, kind: input, shape index: {}]   ;;  %s4985_s7 = inlined_call_operand.hbm [shape: f32[2,8,128], index: 7, kind: output, shape index: {}]  }
   0x1   :  { %5003 = sst [smem:[#allocation26_spill]] %s4979_s1 }
   0x2   :  { %5004 = sst [smem:[#allocation27_spill]] %s4980_s2 }
   0x3   :  { %5005 = sst [smem:[#allocation28_spill]] %s4981_s3 }
   0x4   :  { %5006 = sst [smem:[#allocation29_spill]] %s4983_s5 }
   0x5   :  { %5007 = sst [smem:[#allocation30_spill]] %s4985_s7 }
   0x6   :  { %12 = vsyncpa [#allocation3], 0 }
   0x7   :  { %13 = vsyncpa [#allocation6], 0 }
   0x8   :  { %15 = vsyncpa [#allocation6 + $0x1], 0 }
   0x9   :  { %16 = vsyncpa [#allocation9], 0 }
   0xa   :  { %17 = vsyncpa [#allocation12], 0 }
   0xb   :  { %18 = vsyncpa [#allocation4], 0 }
   0xc   :  { %20 = vsyncpa [#allocation4 + $0x1], 0  ;;  %s4268_s24 = smov 0   ;;  %s4270_s25 = smov 0  }
   0xd   :  { %s4272_s26 = smov 0   ;;  %s4274_s27 = smov 0  }
   0xe   :  { %s4276_s28 = smov 0   ;;  %s4278_s29 = smov 0  }
   0xf   :  { %s4280_s30 = smov 0   ;;  %s4282_s8 = smov 0  }
  0x10   :  { %s4284_s9 = smov 0   ;;  %s4286_s10 = smov 0  }
  0x11   :  { %s4288_s11 = smov 0  }
  0x12 LB: > { %5008 = sst [smem:[#allocation21_spill]] %s4194_s30  ;;  %s4212_s12 = smov [#allocation8]   ;;  %s4210_s11 = sphi %s4288_s11, %s26_s11   ;;  %s4206_s10 = sphi %s4286_s10, %s5058_s10   ;;  %s4202_s9 = sphi %s4284_s9, %s5050_s9   ;;  %s4198_s8 = sphi %s4282_s8, %s5057_s8   ;;  %s4194_s30 = sphi %s4280_s30, %s5049_s30   ;;  %s4190_s29 = sphi %s4278_s29, %s5056_s29   ;;  %s4186_s28 = sphi %s4276_s28, %s5055_s28   ;;  %s4182_s27 = sphi %s4274_s27, %s5054_s27   ;;  %s4178_s26 = sphi %s4272_s26, %s5053_s26   ;;  %s4174_s25 = sphi %s4270_s25, %s5052_s25   ;;  %s4170_s24 = sphi %s4268_s24, %s5051_s24  }
  0x13   : > { %5009 = sst [smem:[#allocation22_spill]] %s4198_s8  ;;  %s249_s13 = sshll.u32 %s4212_s12, 4  ;;  %s4329_s13 = int_to_ptr.vmem [resolvable:$true] %s249_s13 }
  0x14   : > { %5010 = sst [smem:[#allocation23_spill]] %s4202_s9  ;;  %s4324_s14 = sadd.s32 4294967295, %s4210_s11  }
  0x15   : > { %p2843_p0 = scmp.ge.s32.totalorder %s4210_s11, 1  ;;  %p4993_p1 = scmp.eq.s32.totalorder %s4324_s14, 0 }
  0x16   : > { %p226_p2 = scmp.lt.s32.totalorder %s4210_s11, 9  ;;  %s4213_s16 = smov [#allocation11]  }
  0x17   : > { %s273_s17 = sshll.u32 %s4213_s16, 4  ;;  %s5014_s3 = sld [smem:[#allocation28_spill]]  ;;  %s4343_s17 = int_to_ptr.vmem [resolvable:$true] %s273_s17 }
  0x18   : > { %p4331_p3 = pnand %p2843_p0, %p226_p2 }
  0x1a   : > { %s5011_s15 = scalar_select %p4331_p3, 1, 0 }
  0x1b   : > { %p3586_p4 = pneg %p4331_p3 }
  0x1c   : > { %5012 = sst [smem:[#allocation24_spill]] %s5011_s15 }
  0x1d   : > { %p4339_p5 = pnand %p3586_p4, %p4993_p1  ;;  %s3872_s21 = scalar_lea.hbm %s5014_s3, 288 }
  0x1e   : > { %p3873_p6 = scmp.ne.s32.totalorder %s5014_s3, %s3872_s21  ;;  %p3879_p10 = scmp.lt.u32.totalorder %s3872_s21, %s5014_s3 }
  0x1f   : > { %s5013_s18 = scalar_select %p4339_p5, 1, 0 }
  0x20   : > { %p4353_p7 = pneg %p4339_p5 }
  0x22   : > { %p3875_p8 = pnand %p4353_p7, %p3873_p6 }
  0x24   : > { %p3876_p9 = pneg %p3875_p8 }
  0x26   : > { %p3881_p11 = pnand %p3879_p10, %p3876_p9 }
  0x28   : > { %3884 = shalt.err (!%p3881_p11)
}
  0x29   : > { %s3885_s19 = scalar_lea.vmem %s4329_s13, 288  ;;  %p3893_p2 = scmp.lt.s32.totalorder %s4329_s13, %s4329_s13 }
  0x2a   : > { %p3886_p12 = scmp.ne.s32.totalorder %s4329_s13, %s3885_s19  ;;  %p3894_p4 = scmp.lt.s32.totalorder %s3885_s19, %s3885_s19 }
  0x2c   : > { %p3888_p13 = pnand %p3886_p12, %p4353_p7  ;;  %p3895_p6 = por %p3894_p4, %p3893_p2 }
  0x2e   : > { %p3889_p0 = pneg %p3888_p13 }
  0x30   : > { %p3896_p8 = pnand %p3895_p6, %p3889_p0 }
  0x32   : > { %3899 = shalt.err (!%p3896_p8)
}
  0x33   : > { %s4214_s20 = smov 32   ;;  %s4215_s7 = smov 2  }
  0x34   : > { %3592 = dma.hbm_to_vmem [thread:$0]  (!%p4339_p5), %s5014_s3, 288, %s4329_s13, [#allocation9], %s4214_s20, %s4214_s20, %s4215_s7  }
  0x35   : > { %s5016_s5 = sld [smem:[#allocation29_spill]] }
  0x3b   : > { %s3900_s8 = scalar_lea.hbm %s5016_s5, 1024 }
  0x3c   : > { %p3901_p9 = scmp.ne.s32.totalorder %s5016_s5, %s3900_s8  ;;  %p3907_p12 = scmp.lt.u32.totalorder %s3900_s8, %s5016_s5 }
  0x3e   : > { %p3903_p10 = pnand %p3901_p9, %p4353_p7 }
  0x40   : > { %p3904_p11 = pneg %p3903_p10 }
  0x42   : > { %p3909_p13 = pnand %p3907_p12, %p3904_p11 }
  0x44   : > { %3912 = shalt.err (!%p3909_p13)
}
  0x45   : > { %s3913_s13 = scalar_lea.vmem %s4343_s17, 1024  ;;  %p3921_p6 = scmp.lt.s32.totalorder %s4343_s17, %s4343_s17 }
  0x46   : > { %p3914_p0 = scmp.ne.s32.totalorder %s4343_s17, %s3913_s13  ;;  %p3922_p8 = scmp.lt.s32.totalorder %s3913_s13, %s3913_s13 }
  0x48   : > { %p3916_p2 = pnand %p3914_p0, %p4353_p7  ;;  %p3923_p9 = por %p3922_p8, %p3921_p6 }
  0x4a   : > { %p3917_p4 = pneg %p3916_p2 }
  0x4c   : > { %p3924_p10 = pnand %p3923_p9, %p3917_p4 }
  0x4e   : > { %3927 = shalt.err (!%p3924_p10)
}
  0x4f   : > { %s4990_s30 = smov 64   ;;  %s4991_s2 = smov 4  }
  0x50   : > { %3598 = dma.hbm_to_vmem [thread:$0]  (!%p4339_p5), %s5016_s5, 1024, %s4343_s17, [#allocation12], %s4990_s30, %s4990_s30, %s4991_s2  }
  0x51   : > { %s35_s20 = sadd.s32 1, %s4202_s9  ;;  %s66_s7 = sadd.s32 1, %s4190_s29 }
  0x52   : > { %p4402_p11 = scmp.ge.s32.totalorder %s35_s20, 4  ;;  %p73_p12 = scmp.ne.s32.totalorder %s4190_s29, %s4186_s28 }
  0x53   : > { %p4994_p13 = scmp.eq.s32.totalorder %s4210_s11, 0  ;;  %p79_p0 = scmp.ne.s32.totalorder %s4186_s28, %s4182_s27 }
  0x54   : > { %s5017_s21 = scalar_select %p4402_p11, 1, 0 }
  0x55   : > { %s5060_s20 = smov (%p4402_p11, %s35_s20), 0  ;;  %p4417_p2 = por %p4994_p13, %p73_p12 }
  0x56   : > { %5018 = sst [smem:[#allocation25_spill]] %s5060_s20  ;;  %p4423_p4 = por %p4993_p1, %p79_p0 }
  0x57   : > { %s63_s23 = ssub.s32 %s4202_s9, %s5060_s20  ;;  %p4992_p6 = scmp.lt.s32.totalorder %s4210_s11, 8 }
  0x58   : > { %s5020_s17 = scalar_select %p4423_p4, 1, 0 }
  0x59   : > { %p64_p8 = scmp.eq.s32.totalorder %s63_s23, 0  ;;  %s298_s16 = sand.u32 1, %s4210_s11  }
  0x5a   : > { %s300_s27 = sand.u32 1, %s4190_s29   ;;  %s3128_s8 = sshll.u32 %s4202_s9, 11 }
  0x5b   : > { %s4433_s19 = scalar_select %p64_p8, %s4190_s29, %s66_s7  }
  0x5c   : > { %s2850_s13 = sshll.u32 %s300_s27, 7  ;;  %s5021_s1 = sld [smem:[#allocation26_spill]] }
  0x5d   : > { %s302_s3 = scalar_lea.vmem [#allocation5], %s2850_s13  ;;  %p4445_p9 = pnand %p4992_p6, %p4417_p2 }
  0x5e   : > { %s309_s5 = sshll.u32 %s302_s3, 4  ;;  %s4451_s7 = scalar_lea.sflag [#allocation6], %s298_s16  ;;  %s4449_s5 = int_to_ptr.vmem [resolvable:$true] %s309_s5 }
  0x5f   : > { %p3930_p12 = pneg %p4445_p9 }
  0x62   : > { %s4439_s2 = scalar_lea.hbm %s5021_s1, %s3128_s8  ;;  %s3933_s27 = scalar_lea.hbm %s5021_s1, 8192 }
  0x63   : > { %s3928_s30 = scalar_lea.hbm %s4439_s2, 2048  ;;  %p3934_p2 = scmp.lt.u32.totalorder %s4439_s2, %s5021_s1 }
  0x64   : > { %p3929_p10 = scmp.ne.s32.totalorder %s4439_s2, %s3928_s30  ;;  %p3935_p6 = scmp.lt.u32.totalorder %s3933_s27, %s3928_s30 }
  0x65   : > { %p3937_p13 = scmp.lt.u32.totalorder %s3928_s30, %s4439_s2 }
  0x66   : > { %p3931_p0 = pnand %p3930_p12, %p3929_p10  ;;  %p3936_p1 = por %p3935_p6, %p3934_p2 }
  0x68   : > { %p3932_p8 = pneg %p3931_p0  ;;  %p3938_p4 = por %p3937_p13, %p3936_p1 }
  0x6a   : > { %p3939_p3 = pnand %p3938_p4, %p3932_p8 }
  0x6c   : > { %3942 = shalt.err (!%p3939_p3)
}
  0x6d   : > { %s3943_s16 = scalar_lea.vmem %s4449_s5, 2048  ;;  %s4218_s15 = smov [#allocation5]  }
  0x6e   : > { %p3944_p10 = scmp.ne.s32.totalorder %s4449_s5, %s3943_s16  ;;  %s3948_s3 = sshll.u32 %s4218_s15, 4  ;;  %s3949_s3 = int_to_ptr.vmem [resolvable:$false] %s3948_s3 }
  0x6f   : > { %s3950_s22 = scalar_lea.vmem %s3949_s3, 4096  ;;  %p3951_p5 = scmp.lt.s32.totalorder %s4449_s5, %s3949_s3 }
  0x70   : > { %p3946_p0 = pnand %p3944_p10, %p3930_p12  ;;  %p3952_p6 = scmp.lt.s32.totalorder %s3950_s22, %s3943_s16 }
  0x72   : > { %p3947_p11 = pneg %p3946_p0  ;;  %p3953_p2 = por %p3952_p6, %p3951_p5 }
  0x74   : > { %p3954_p1 = pnand %p3953_p2, %p3947_p11 }
  0x76   : > { %3957 = shalt.err (!%p3954_p1)
}
  0x77   : > { %s4219_s30 = smov 128   ;;  %s4220_s27 = smov 8  }
  0x78   : > { %3605 = dma.hbm_to_vmem [thread:$0]  (!%p4445_p9), %s4439_s2, 2048, %s4449_s5, %s4451_s7, %s4219_s30, %s4219_s30, %s4220_s27  }
  0x79   : > { %s4221_s13 = smov [#allocation2]   ;;  %s4222_s1 = smov [#allocation10]  }
  0x7a   : > { %s239_s8 = sshll.u32 %s4221_s13, 4  ;;  %s263_s15 = sshll.u32 %s4222_s1, 4  ;;  %s240_s8 = int_to_ptr.vmem [resolvable:$true] %s239_s8  ;;  %s4479_s15 = int_to_ptr.vmem [resolvable:$true] %s263_s15 }
  0x7b   : > { %s3958_s22 = scalar_lea.hbm %s4978_s0, 16 }
  0x7c   : > { %p3959_p3 = scmp.ne.s32.totalorder %s4978_s0, %s3958_s22  ;;  %p3965_p13 = scmp.lt.u32.totalorder %s3958_s22, %s4978_s0 }
  0x7e   : > { %p3961_p5 = pnand %p3959_p3, %p4353_p7 }
  0x80   : > { %p3962_p11 = pneg %p3961_p5 }
  0x82   : > { %p3967_p4 = pnand %p3965_p13, %p3962_p11 }
  0x84   : > { %3970 = shalt.err (!%p3967_p4)
}
  0x85   : > { %s3971_s1 = scalar_lea.vmem %s240_s8, 16  ;;  %s3978_s2 = scalar_lea.vmem %s240_s8, 32 }
  0x86   : > { %p3972_p9 = scmp.ne.s32.totalorder %s240_s8, %s3971_s1  ;;  %p3979_p10 = scmp.lt.s32.totalorder %s240_s8, %s240_s8 }
  0x87   : > { %p3980_p0 = scmp.lt.s32.totalorder %s3978_s2, %s3971_s1 }
  0x88   : > { %p3974_p12 = pnand %p3972_p9, %p4353_p7 }
  0x89   : > { %p3981_p6 = por %p3980_p0, %p3979_p10 }
  0x8a   : > { %p3975_p8 = pneg %p3974_p12 }
  0x8c   : > { %p3982_p2 = pnand %p3981_p6, %p3975_p8 }
  0x8e   : > { %3985 = shalt.err (!%p3982_p2)
}
  0x8f   : > { %p5023_p1 = scmp.ne.s32.totalorder %s5013_s18, 0  ;;  %s3986_s13 = scalar_lea.hbm %s4982_s4, 16 }
  0x90   : > { %p3987_p3 = scmp.ne.s32.totalorder %s4982_s4, %s3986_s13  ;;  %p3993_p13 = scmp.lt.u32.totalorder %s3986_s13, %s4982_s4 }
  0x91   : > { %3589 = dma.hbm_to_vmem [thread:$0]  (!%p5023_p1), %s4978_s0, 16, %s240_s8, [#allocation3]  }
  0x92   : > { %p3989_p5 = pnand %p3987_p3, %p4353_p7 }
  0x94   : > { %p3990_p11 = pneg %p3989_p5 }
  0x96   : > { %p3995_p4 = pnand %p3993_p13, %p3990_p11 }
  0x98   : > { %3998 = shalt.err (!%p3995_p4)
}
  0x99   : > { %s3999_s8 = scalar_lea.vmem %s4479_s15, 16  ;;  %s4006_s5 = scalar_lea.vmem %s4479_s15, 32 }
  0x9a   : > { %p4000_p9 = scmp.ne.s32.totalorder %s4479_s15, %s3999_s8  ;;  %p4007_p10 = scmp.lt.s32.totalorder %s4479_s15, %s4479_s15 }
  0x9b   : > { %p4008_p0 = scmp.lt.s32.totalorder %s4006_s5, %s3999_s8 }
  0x9c   : > { %p4002_p12 = pnand %p4000_p9, %p4353_p7 }
  0x9d   : > { %p4009_p6 = por %p4008_p0, %p4007_p10 }
  0x9e   : > { %p4003_p8 = pneg %p4002_p12 }
  0xa0   : > { %p4010_p2 = pnand %p4009_p6, %p4003_p8 }
  0xa2   : > { %4013 = shalt.err (!%p4010_p2)
}
  0xa3   : > { %3595 = dma.hbm_to_vmem [thread:$0]  (!%p5023_p1), %s4982_s4, 16, %s4479_s15, [#allocation9]  }
  0xa4   : > { %s4223_s9 = smov [#allocation13]   ;;  %s4014_s13 = scalar_lea.hbm %s4984_s6, 16 }
  0xa5   : > { %s287_s20 = sshll.u32 %s4223_s9, 4  ;;  %p4015_p3 = scmp.ne.s32.totalorder %s4984_s6, %s4014_s13  ;;  %s288_s20 = int_to_ptr.vmem [resolvable:$true] %s287_s20 }
  0xa6   : > { %p4021_p13 = scmp.lt.u32.totalorder %s4014_s13, %s4984_s6 }
  0xa7   : > { %p4017_p5 = pnand %p4015_p3, %p4353_p7 }
  0xa9   : > { %p4018_p11 = pneg %p4017_p5 }
  0xab   : > { %p4023_p4 = pnand %p4021_p13, %p4018_p11 }
  0xad   : > { %4026 = shalt.err (!%p4023_p4)
}
  0xae   : > { %s4027_s15 = scalar_lea.vmem %s288_s20, 16  ;;  %s4034_s8 = scalar_lea.vmem %s288_s20, 32 }
  0xaf   : > { %p4028_p9 = scmp.ne.s32.totalorder %s288_s20, %s4027_s15  ;;  %p4035_p10 = scmp.lt.s32.totalorder %s288_s20, %s288_s20 }
  0xb0   : > { %p4036_p0 = scmp.lt.s32.totalorder %s4034_s8, %s4027_s15 }
  0xb1   : > { %p4030_p12 = pnand %p4028_p9, %p4353_p7 }
  0xb2   : > { %p4037_p6 = por %p4036_p0, %p4035_p10 }
  0xb3   : > { %p4031_p8 = pneg %p4030_p12 }
  0xb5   : > { %p4038_p2 = pnand %p4037_p6, %p4031_p8 }
  0xb7   : > { %4041 = shalt.err (!%p4038_p2)
}
  0xb8   : > { %3601 = dma.hbm_to_vmem [thread:$0]  (!%p5023_p1), %s4984_s6, 16, %s288_s20, [#allocation12]  }
  0xb9   : > { %s2842_s12 = sadd.s32 4294967294, %s4210_s11   ;;  %s38_s18 = sadd.s32 1, %s4206_s10 }
  0xba   : > { %s92_s2 = sadd.s32 1, %s4178_s26  ;;  %p5024_p7 = scmp.ne.s32.totalorder %s5017_s21, 0 }
  0xbb   : > { %p99_p3 = scmp.ne.s32.totalorder %s4178_s26, %s4174_s25  ;;  %p105_p5 = scmp.ne.s32.totalorder %s4174_s25, %s4170_s24 }
  0xbc   : > { %s5062_s18 = smov (!%p5024_p7, %s38_s18), %s4206_s10  ;;  %p213_p13 = scmp.eq.s32.totalorder %s4324_s14, 7 }
  0xbd   : > { %p40_p11 = scmp.ge.s32.totalorder %s5062_s18, 2  ;;  %p5025_p4 = scmp.eq.s32.totalorder %s4210_s11, 0 }
  0xbe   : > { %p5026_p12 = scmp.eq.s32.totalorder %s4324_s14, 0  ;;  %p4562_p1 = por %p213_p13, %p99_p3 }
  0xbf   : > { %p101_p9 = por %p99_p3, %p5025_p4  ;;  %s5064_s18 = smov (%p40_p11, %s5062_s18), 0 }
  0xc0   : > { %p4556_p8 = por %p105_p5, %p5026_p12  ;;  %p219_p10 = scmp.eq.s32.totalorder %s2842_s12, 7 }
  0xc1   : > { %s5028_s21 = scalar_select %p4562_p1, 1, 0 }
  0xc2   : > { %s89_s20 = ssub.s32 %s4206_s10, %s5064_s18  ;;  %s321_s30 = sand.u32 1, %s4178_s26  }
  0xc3   : > { %p90_p0 = scmp.eq.s32.totalorder %s89_s20, 0  ;;  %p4569_p6 = por %p219_p10, %p105_p5 }
  0xc4   : > { %s3557_s13 = smul.u32 864, %s321_s30  ;;  %p5030_p2 = scmp.lt.s32.totalorder %s4210_s11, 8 }
  0xc5   : > { %s5029_s27 = scalar_select %p4569_p6, 1, 0 }
  0xc6   : > { %p4575_p7 = pnand %p5030_p2, %p101_p9  ;;  %s3558_s22 = smul.u32 13824, %s4206_s10 }
  0xc7   : > { %s4580_s3 = scalar_select %p90_p0, %s4178_s26, %s92_s2  }
  0xc8   : > { %s323_s23 = scalar_lea.vmem [#allocation7], %s3557_s13  ;;  %s5032_s1 = sld [smem:[#allocation27_spill]] }
  0xc9   : > { %s330_s15 = sshll.u32 %s323_s23, 4  ;;  %p4044_p5 = pneg %p4575_p7  ;;  %s4588_s15 = int_to_ptr.vmem [resolvable:$true] %s330_s15 }
  0xce   : > { %s4586_s12 = scalar_lea.hbm %s5032_s1, %s3558_s22  ;;  %s4047_s13 = scalar_lea.hbm %s5032_s1, 27648 }
  0xcf   : > { %s4042_s20 = scalar_lea.hbm %s4586_s12, 13824  ;;  %p4048_p4 = scmp.lt.u32.totalorder %s4586_s12, %s5032_s1 }
  0xd0   : > { %p4043_p3 = scmp.ne.s32.totalorder %s4586_s12, %s4042_s20  ;;  %p4049_p9 = scmp.lt.u32.totalorder %s4047_s13, %s4042_s20 }
  0xd1   : > { %p4051_p10 = scmp.lt.u32.totalorder %s4042_s20, %s4586_s12 }
  0xd2   : > { %p4045_p11 = pnand %p4044_p5, %p4043_p3  ;;  %p4050_p12 = por %p4049_p9, %p4048_p4 }
  0xd4   : > { %p4046_p13 = pneg %p4045_p11  ;;  %p4052_p0 = por %p4051_p10, %p4050_p12 }
  0xd6   : > { %p4053_p2 = pnand %p4052_p0, %p4046_p13 }
  0xd8   : > { %4056 = shalt.err (!%p4053_p2)
}
  0xd9   : > { %s4057_s8 = scalar_lea.vmem %s4588_s15, 13824  ;;  %s4224_s5 = smov [#allocation7]  }
  0xda   : > { %p4058_p3 = scmp.ne.s32.totalorder %s4588_s15, %s4057_s8  ;;  %s4062_s2 = sshll.u32 %s4224_s5, 4  ;;  %s4063_s2 = int_to_ptr.vmem [resolvable:$false] %s4062_s2 }
  0xdb   : > { %s4064_s30 = scalar_lea.vmem %s4063_s2, 27648  ;;  %p4065_p1 = scmp.lt.s32.totalorder %s4588_s15, %s4063_s2 }
  0xdc   : > { %p4060_p11 = pnand %p4058_p3, %p4044_p5  ;;  %p4066_p4 = scmp.lt.s32.totalorder %s4064_s30, %s4057_s8 }
  0xde   : > { %p4061_p6 = pneg %p4060_p11  ;;  %p4067_p9 = por %p4066_p4, %p4065_p1 }
  0xe0   : > { %p4068_p12 = pnand %p4067_p9, %p4061_p6 }
  0xe2   : > { %4071 = shalt.err (!%p4068_p12)
}
  0xe3   : > { %s5033_s20 = smov 4   ;;  %s5034_s13 = smov 64  }
  0xe4   : > { %3608 = dma.hbm_to_vmem [thread:$0]  (!%p4575_p7), %s4586_s12, 13824, %s4588_s15, %s4451_s7, %s5034_s13, %s5034_s13, %s5033_s20  }
  0xe5   : > { %s5035_s22 = sld [smem:[#allocation24_spill]] }
  0xeb   : > { %p5036_p5 = scmp.ne.s32.totalorder %s5035_s22, 0 }
  0xec   : > { %p5037_p13 = scmp.eq.s32.totalorder (!%p5036_p5), %s4324_s14, 0 }
  0xed   : > { %342 = sbr.rel (%p5036_p5) target bundleno = 935 (0x3a7), region = 48 }
  0xf4   : > { %4145 = dma.done.wait (%p5037_p13), [#allocation3], 16   ;;  %p5038_p10 = pmov %p5037_p13 }
  0xf5   : > { %s348_s16 = sand.u32 1, %s4324_s14   ;;  %s350_s23 = sand.u32 1, %s4186_s28  }
  0xf6   : > { %4147 = vsyncadd (%p5038_p10), [#allocation3], 4294967280  ;;  %s2856_s8 = sshll.u32 %s350_s23, 7  ;;  %s349_s5 = scalar_lea.sflag [#allocation6], %s348_s16 }
  0xf7   : > { %s4627_s2 = scalar_lea.vmem [#allocation5], %s2856_s8  ;;  %p5039_p1 = scmp.ne.s32.totalorder %s5020_s17, 0 }
  0xf9   : > { %4149 = dma.done.wait (%p5039_p1), %s349_s5, 2048  }
  0xfa   : > { %4151 = vsyncadd (%p5039_p1), %s349_s5, 4294965248  ;;  %s4634_s7 = sand.u32 1, %s4174_s25  }
  0xfb   : > { %s3559_s15 = smul.u32 864, %s4634_s7 }
  0xfd   : > { %s4637_s12 = scalar_lea.vmem [#allocation7], %s3559_s15 }
  0xfe   : > { %4153 = dma.done.wait (%p4556_p8), %s349_s5, 13824  }
  0xff   : > { %4155 = vsyncadd (%p4556_p8), %s349_s5, 4294953472  ;;  %p5040_p6 = pmov %p5038_p10 }
 0x101   : > { %4157 = dma.done.wait (%p5040_p6), [#allocation9], 304   ;;  %p5041_p7 = pmov %p5040_p6 }
 0x102   : > { %p5042_p0 = pmov %p5040_p6 }
 0x103   : > { %4159 = vsyncadd (%p5041_p7), [#allocation9], 4294966992 }
 0x104   : > { %4161 = dma.done.wait (%p5042_p0), [#allocation12], 1040   ;;  %p5043_p2 = pmov %p5042_p0 }
 0x105   : > { %s5044_s17 = sld [smem:[#allocation21_spill]]  ;;  %s2861_s30 = sshll.u32 %s4634_s7, 3  ;;  %vm523_vm0 = vcmask 1041408   ;;  %vm498_vm1 = vcmask 31744   ;;  %v457_v0 = vld [vmem:[#allocation8 + $0x2] sm:$0x3] }
 0x106   : > { %4163 = vsyncadd (%p5043_p2), [#allocation12], 4294966256  ;;  %v1212_v1 = vld [vmem:[#allocation8 + $0x8] sm:$0x3]  ;;  %3548 = vmatprep.subr.msk.bf16.mxu1 %vm523_vm0, %v457_v0  ;;  %v525_v2 = vsel %vm523_vm0, %v457_v0, 0 }
 0x107   : > { %3552 = vmatprep.subr.msk.bf16.mxu0 %vm523_vm0, %v1212_v1  ;;  %v1278_v3 = vsel %vm523_vm0, %v1212_v1, 0  ;;  %3227 = vmatpush3.bf16.msra.mxu1 %v525_v2  ;;  %v1413_v8 = vld [vmem:[#allocation8 + $0xa] sm:$0x3]  ;;  %v436_v18 = vld [vmem:[#allocation8] sm:$0x3] }
 0x108   : > { %3299 = vmatpush3.bf16.msra.mxu0 %v1278_v3  ;;  %v1479_v9 = vsel %vm523_vm0, %v1413_v8, 0  ;;  %3549 = vmatprep.subr.msk.bf16.mxu1 %vm523_vm0, %v436_v18  ;;  %v689_v20 = vsel %vm523_vm0, %v436_v18, 0  ;;  %v1616_v22 = vld [vmem:[#allocation8 + $0xc] sm:$0x3]  ;;  %v808_v29 = vld [vmem:[#allocation8 + $0x4] sm:$0x3] }
 0x109   : > { %3553 = vmatprep.subr.msk.bf16.mxu0 %vm523_vm0, %v1413_v8  ;;  %v1682_v32 = vsel %vm523_vm0, %v1616_v22, 0  ;;  %v874_v33 = vsel %vm523_vm0, %v808_v29, 0  ;;  %v1817_v34 = vld [vmem:[#allocation8 + $0xe] sm:$0x3]  ;;  %v1011_v42 = vld [vmem:[#allocation8 + $0x6] sm:$0x3] }
 0x10a   : > { %v1883_v52 = vsel %vm523_vm0, %v1817_v34, 0  ;;  %v1077_v53 = vsel %vm523_vm0, %v1011_v42, 0  ;;  %v2018_v54 = vld [vmem:[#allocation8 + $0x10] sm:$0x3] }
 0x10b   : > { %s4653_s20 = sshll.u32 %s5044_s17, 7  ;;  %p3123_p8 = scmp.ne.s32.totalorder %s5044_s17, 0 }
 0x10c   : > { %s416_s9 = sshra.s32 %s4653_s20, 3  ;;  %s989_s22 = sadd.s32 32, %s4653_s20 }
 0x10d   : > { %s2863_s13 = sshll.u32 %s416_s9, 2  ;;  %s990_s23 = sshra.s32 %s989_s22, 3 }
 0x10e   : > { %s4658_s16 = scalar_lea.vmem %s4637_s12, %s2863_s13 [#allocation7]  ;;  %s2946_s14 = sshll.u32 %s990_s23, 2 }
 0x10f   : > { %s4661_s8 = scalar_lea.vmem %s4637_s12, %s2946_s14 [#allocation7]  ;;  %v3728_v4 = vld [vmem:[%s4658_s16 + $0x120] sm:$0xff]   ;;  %v3730_v6 = vld [vmem:[%s4658_s16 + $0x128] sm:$0xff]   ;;  %v3732_v10 = vld [vmem:[%s4658_s16 + $0x130] sm:$0xff]   ;;  %s1594_s5 = sadd.s32 64, %s4653_s20 }
 0x110   : > { %v3729_v5 = vld [vmem:[%s4661_s8 + $0x120] sm:$0xff]   ;;  %3228 = vmatprep.mubr.msk.bf16.mxu1 %vm498_vm1, %v3728_v4  ;;  %v3731_v7 = vld [vmem:[%s4661_s8 + $0x128] sm:$0xff]   ;;  %v3733_v11 = vld [vmem:[%s4661_s8 + $0x130] sm:$0xff]   ;;  %s1595_s15 = sshra.s32 %s1594_s5, 3 }
 0x111   : > { %3300 = vmatprep.mubr.msk.bf16.mxu0 %vm498_vm1, %v3729_v5  ;;  %3229 = vmatmul.mubr.msk.bf16.vlgmr.msra.gmra.mrb[0].mxu1 %vm498_vm1, %v3730_v6  ;;  %v3734_v12 = vld [vmem:[%s4658_s16 + $0x138] sm:$0xff]   ;;  %v3736_v14 = vld [vmem:[%s4658_s16 + $0x140] sm:$0xff]   ;;  %v3738_v16 = vld [vmem:[%s4658_s16 + $0x148] sm:$0xff]   ;;  %s3029_s9 = sshll.u32 %s1595_s15, 2 }
 0x112   : > { %3301 = vmatmul.mubr.msk.bf16.vlgmr.msra.gmra.mrb[0].mxu0 %vm498_vm1, %v3731_v7  ;;  %3232 = vmatprep.mubr.msk.bf16.mxu1 %vm498_vm1, %v3732_v10  ;;  %v3735_v13 = vld [vmem:[%s4661_s8 + $0x138] sm:$0xff]   ;;  %v3737_v15 = vld [vmem:[%s4661_s8 + $0x140] sm:$0xff]   ;;  %v3739_v17 = vld [vmem:[%s4661_s8 + $0x148] sm:$0xff]   ;;  %s4712_s20 = scalar_lea.vmem %s4637_s12, %s3029_s9 [#allocation7]  ;;  %v2084_v7 = vsel %vm523_vm0, %v2018_v54, 0 }
 0x113   : > { %3317 = vmatpush3.bf16.msra.mxu0 %v1479_v9  ;;  %3304 = vmatprep.mubr.msk.bf16.mxu0 %vm498_vm1, %v3733_v11  ;;  %v3740_v19 = vld [vmem:[%s4658_s16 + $0x150] sm:$0xff]   ;;  %v3742_v23 = vld [vmem:[%s4658_s16 + $0x158] sm:$0xff]   ;;  %v3744_v25 = vld [vmem:[%s4658_s16] sm:$0xff]  }
 0x114   : > { %v3741_v21 = vld [vmem:[%s4661_s8 + $0x150] sm:$0xff]   ;;  %3245 = vmatpush3.bf16.msra.mxu1 %v689_v20  ;;  %3554 = vmatprep.subr.msk.bf16.mxu0 %vm523_vm0, %v1616_v22  ;;  %v3743_v24 = vld [vmem:[%s4661_s8 + $0x158] sm:$0xff]   ;;  %v3745_v26 = vld [vmem:[%s4661_s8 + $0x240] sm:$0xff]  }
 0x115   : > { %v3746_v27 = vld [vmem:[%s4658_s16 + $0x8] sm:$0xff]   ;;  %v3748_v30 = vld [vmem:[%s4658_s16 + $0x10] sm:$0xff]   ;;  %3550 = vmatprep.subr.msk.bf16.mxu1 %vm523_vm0, %v808_v29  ;;  %v3750_v35 = vld [vmem:[%s4658_s16 + $0x18] sm:$0xff]  }
 0x116   : > { %v3747_v28 = vld [vmem:[%s4661_s8 + $0x248] sm:$0xff]   ;;  %v3749_v31 = vld [vmem:[%s4661_s8 + $0x250] sm:$0xff]   ;;  %v3751_v36 = vld [vmem:[%s4661_s8 + $0x258] sm:$0xff]  }
 0x117   : > { %v3752_v37 = vld [vmem:[%s4658_s16 + $0x20] sm:$0xff]   ;;  %v3754_v39 = vld [vmem:[%s4658_s16 + $0x28] sm:$0xff]   ;;  %v3756_v41 = vld [vmem:[%s4658_s16 + $0x30] sm:$0xff]  }
 0x118   : > { %v3753_v38 = vld [vmem:[%s4661_s8 + $0x260] sm:$0xff]   ;;  %v3755_v40 = vld [vmem:[%s4661_s8 + $0x268] sm:$0xff]   ;;  %v3757_v43 = vld [vmem:[%s4661_s8 + $0x270] sm:$0xff]  }
 0x119   : > { %3233 = vmatmul.mubr.msk.bf16.gmra.mrb[4].mxu1 %vm498_vm1, %v3734_v12  ;;  %v3758_v44 = vld [vmem:[%s4658_s16 + $0x38] sm:$0xff]   ;;  %v3760_v46 = vld [vmem:[%s4658_s16 + $0x240] sm:$0xff]   ;;  %v3762_v48 = vld [vmem:[%s4658_s16 + $0x248] sm:$0xff]  }
 0x11a   : > { %3305 = vmatmul.mubr.msk.bf16.gmra.mrb[4].mxu0 %vm498_vm1, %v3735_v13  ;;  %3236 = vmatprep.mubr.msk.bf16.mxu1 %vm498_vm1, %v3736_v14  ;;  %v3759_v45 = vld [vmem:[%s4661_s8 + $0x278] sm:$0xff]   ;;  %v3761_v47 = vld [vmem:[%s4712_s20] sm:$0xff]   ;;  %v3763_v49 = vld [vmem:[%s4712_s20 + $0x8] sm:$0xff]  }
 0x11b   : > { %3308 = vmatprep.mubr.msk.bf16.mxu0 %vm498_vm1, %v3737_v15  ;;  %v3764_v50 = vld [vmem:[%s4658_s16 + $0x250] sm:$0xff]   ;;  %v3766_v55 = vld [vmem:[%s4658_s16 + $0x258] sm:$0xff]   ;;  %v3768_v57 = vld [vmem:[%s4658_s16 + $0x260] sm:$0xff]  }
 0x11c   : > { %v3765_v51 = vld [vmem:[%s4712_s20 + $0x10] sm:$0xff]   ;;  %v3767_v56 = vld [vmem:[%s4712_s20 + $0x18] sm:$0xff]   ;;  %v3769_v58 = vld [vmem:[%s4712_s20 + $0x20] sm:$0xff]  }
 0x11d   : > { %v3770_v59 = vld [vmem:[%s4658_s16 + $0x268] sm:$0xff]   ;;  %v3772_v61 = vld [vmem:[%s4658_s16 + $0x270] sm:$0xff]   ;;  %v3774_v63 = vld [vmem:[%s4658_s16 + $0x278] sm:$0xff]  }
 0x11e   : > { %v3771_v60 = vld [vmem:[%s4712_s20 + $0x28] sm:$0xff]   ;;  %v3773_v62 = vld [vmem:[%s4712_s20 + $0x30] sm:$0xff]   ;;  %v3775_v0 = vld [vmem:[%s4712_s20 + $0x38] sm:$0xff]  }
 0x11f   : > { %v3776_v1 = vld [vmem:[%s4661_s8] sm:$0xff]   ;;  %v3778_v3 = vld [vmem:[%s4661_s8 + $0x8] sm:$0xff]   ;;  %v3780_v5 = vld [vmem:[%s4661_s8 + $0x10] sm:$0xff]  }
 0x120   : > { %v3777_v2 = vld [vmem:[%s4712_s20 + $0x120] sm:$0xff]   ;;  %v3779_v4 = vld [vmem:[%s4712_s20 + $0x128] sm:$0xff]   ;;  %v3781_v6 = vld [vmem:[%s4712_s20 + $0x130] sm:$0xff]  }
 0x121   : > { %3237 = vmatmul.mubr.msk.bf16.gmra.mrb[8].mxu1 %vm498_vm1, %v3738_v16  ;;  %v3782_v8 = vld [vmem:[%s4661_s8 + $0x18] sm:$0xff]   ;;  %v3784_v10 = vld [vmem:[%s4661_s8 + $0x20] sm:$0xff]   ;;  %v3786_v12 = vld [vmem:[%s4661_s8 + $0x28] sm:$0xff]  }
 0x122   : > { %3309 = vmatmul.mubr.msk.bf16.gmra.mrb[8].mxu0 %vm498_vm1, %v3739_v17  ;;  %3240 = vmatprep.mubr.msk.bf16.mxu1 %vm498_vm1, %v3740_v19  ;;  %v3783_v9 = vld [vmem:[%s4712_s20 + $0x138] sm:$0xff]   ;;  %v3785_v11 = vld [vmem:[%s4712_s20 + $0x140] sm:$0xff]   ;;  %v3787_v13 = vld [vmem:[%s4712_s20 + $0x148] sm:$0xff]  }
 0x123   : > { %3312 = vmatprep.mubr.msk.bf16.mxu0 %vm498_vm1, %v3741_v21  ;;  %v3788_v14 = vld [vmem:[%s4661_s8 + $0x30] sm:$0xff]   ;;  %v3790_v16 = vld [vmem:[%s4661_s8 + $0x38] sm:$0xff]   ;;  %v3792_v18 = vld [vmem:[%s4712_s20 + $0x240] sm:$0xff]  }
 0x124   : > { %v3789_v15 = vld [vmem:[%s4712_s20 + $0x150] sm:$0xff]   ;;  %v3791_v17 = vld [vmem:[%s4712_s20 + $0x158] sm:$0xff]   ;;  %v3793_v19 = vld [vmem:[%s4712_s20 + $0x248] sm:$0xff]  }
 0x125   : > { %v3794_v20 = vld [vmem:[%s4712_s20 + $0x250] sm:$0xff]   ;;  %v3795_v21 = vld [vmem:[%s4712_s20 + $0x258] sm:$0xff]   ;;  %v3796_v22 = vld [vmem:[%s4712_s20 + $0x260] sm:$0xff]  }
 0x126   : > { %v3803_v29 = vld [vmem:[#allocation11 + $0x18] sm:$0xff]  }
 0x129   : > { %3241 = vmatmul.mubr.msk.bf16.gmra.mrb[12].mxu1 %vm498_vm1, %v3742_v23  ;;  %v3797_v23 = vld [vmem:[%s4712_s20 + $0x268] sm:$0xff]  }
 0x12a   : > { %3313 = vmatmul.mubr.msk.bf16.gmra.mrb[12].mxu0 %vm498_vm1, %v3743_v24  ;;  %3246 = vmatprep.mubr.msk.bf16.mxu1 %vm498_vm1, %v3744_v25  ;;  %v3798_v24 = vld [vmem:[%s4712_s20 + $0x270] sm:$0xff]   ;;  %v3799_v25 = vld [vmem:[%s4712_s20 + $0x278] sm:$0xff]  }
 0x12b   : > { %3318 = vmatprep.mubr.msk.bf16.mxu0 %vm498_vm1, %v3745_v26  ;;  %v3800_v26 = vld [vmem:[#allocation11] sm:$0xff]  }
 0x131   : > { %3247 = vmatmul.mubr.msk.bf16.vlgmr.msra.gmra.mrb[0].mxu1 %vm498_vm1, %v3746_v27  ;;  %v3801_v27 = vld [vmem:[#allocation11 + $0x8] sm:$0xff]  }
 0x132   : > { %3319 = vmatmul.mubr.msk.bf16.vlgmr.msra.gmra.mrb[0].mxu0 %vm498_vm1, %v3747_v28  ;;  %3250 = vmatprep.mubr.msk.bf16.mxu1 %vm498_vm1, %v3748_v30  ;;  %v3802_v28 = vld [vmem:[#allocation11 + $0x10] sm:$0xff]   ;;  %v3804_v30 = vld [vmem:[#allocation11 + $0x20] sm:$0xff]  }
 0x133   : > { %3335 = vmatpush3.bf16.msra.mxu0 %v1682_v32  ;;  %3322 = vmatprep.mubr.msk.bf16.mxu0 %vm498_vm1, %v3749_v31  ;;  %v3805_v31 = vld [vmem:[#allocation11 + $0x28] sm:$0xff]   ;;  %v3806_v32 = vld [vmem:[#allocation11 + $0x30] sm:$0xff]  }
 0x134   : > { %3263 = vmatpush3.bf16.msra.mxu1 %v874_v33  ;;  %3555 = vmatprep.subr.msk.bf16.mxu0 %vm523_vm0, %v1817_v34  ;;  %v3807_v33 = vld [vmem:[#allocation11 + $0x38] sm:$0xff]   ;;  %v2517_v34 = vld [vmem:[%s4627_s2] sm:$0xff] }
 0x135   : > { %3551 = vmatprep.subr.msk.bf16.mxu1 %vm523_vm0, %v1011_v42  ;;  %v2524_v42 = vld [vmem:[%s4627_s2 + $0x38] sm:$0xff] }
 0x139   : > { %3251 = vmatmul.mubr.msk.bf16.gmra.mrb[4].mxu1 %vm498_vm1, %v3750_v35  ;;  %v2519_v35 = vld [vmem:[%s4627_s2 + $0x10] sm:$0xff] }
 0x13a   : > { %3323 = vmatmul.mubr.msk.bf16.gmra.mrb[4].mxu0 %vm498_vm1, %v3751_v36  ;;  %3254 = vmatprep.mubr.msk.bf16.mxu1 %vm498_vm1, %v3752_v37  ;;  %v4225_v36 = vmov 0   ;;  %v2518_v37 = vld [vmem:[%s4627_s2 + $0x8] sm:$0xff] }
 0x13b   : > { %3326 = vmatprep.mubr.msk.bf16.mxu0 %vm498_vm1, %v3753_v38  ;;  %3726 = vset.pattern.permute.xlu0 %v4225_v36  ;;  %v2520_v38 = vld [vmem:[%s4627_s2 + $0x18] sm:$0xff] }
 0x13c   : > { %3727 = vset.pattern.permute.xlu1 %v4225_v36  ;;  %2535 = vperm.xlu0 %3726, %v2517_v34  }
 0x13d   : > { %2545 = vperm.xlu1 %3727, %v2519_v35  }
 0x140   : > { %2540 = vperm.xlu0 %3726, %v2518_v37  }
 0x141   : > { %3255 = vmatmul.mubr.msk.bf16.gmra.mrb[8].mxu1 %vm498_vm1, %v3754_v39  ;;  %2550 = vperm.xlu1 %3727, %v2520_v38   ;;  %v2521_v39 = vld [vmem:[%s4627_s2 + $0x20] sm:$0xff] }
 0x142   : > { %3327 = vmatmul.mubr.msk.bf16.gmra.mrb[8].mxu0 %vm498_vm1, %v3755_v40  ;;  %3258 = vmatprep.mubr.msk.bf16.mxu1 %vm498_vm1, %v3756_v41  ;;  %v2522_v40 = vld [vmem:[%s4627_s2 + $0x28] sm:$0xff]  ;;  %v2523_v41 = vld [vmem:[%s4627_s2 + $0x30] sm:$0xff] }
 0x143   : > { %3330 = vmatprep.mubr.msk.bf16.mxu0 %vm498_vm1, %v3757_v43  ;;  %v2525_v43 = vld [vmem:[%s4627_s2 + $0x40] sm:$0xff] }
 0x144   : > { %2555 = vperm.xlu0 %3726, %v2521_v39  }
 0x145   : > { %2560 = vperm.xlu1 %3727, %v2522_v40  }
 0x148   : > { %2565 = vperm.xlu0 %3726, %v2523_v41  }
 0x149   : > { %3259 = vmatmul.mubr.msk.bf16.gmra.mrb[12].mxu1 %vm498_vm1, %v3758_v44  ;;  %2570 = vperm.xlu1 %3727, %v2524_v42   ;;  %v2526_v44 = vld [vmem:[%s4627_s2 + $0x48] sm:$0xff] }
 0x14a   : > { %3331 = vmatmul.mubr.msk.bf16.gmra.mrb[12].mxu0 %vm498_vm1, %v3759_v45  ;;  %3264 = vmatprep.mubr.msk.bf16.mxu1 %vm498_vm1, %v3760_v46  ;;  %v2527_v45 = vld [vmem:[%s4627_s2 + $0x50] sm:$0xff]  ;;  %v2528_v46 = vld [vmem:[%s4627_s2 + $0x58] sm:$0xff] }
 0x14b   : > { %3336 = vmatprep.mubr.msk.bf16.mxu0 %vm498_vm1, %v3761_v47  ;;  %v2529_v47 = vld [vmem:[%s4627_s2 + $0x60] sm:$0xff] }
 0x14c   : > { %2575 = vperm.xlu0 %3726, %v2525_v43  }
 0x14d   : > { %2580 = vperm.xlu1 %3727, %v2526_v44  }
 0x150   : > { %2585 = vperm.xlu0 %3726, %v2527_v45  }
 0x151   : > { %3265 = vmatmul.mubr.msk.bf16.vlgmr.msra.gmra.mrb[0].mxu1 %vm498_vm1, %v3762_v48  ;;  %2590 = vperm.xlu1 %3727, %v2528_v46   ;;  %v2530_v48 = vld [vmem:[%s4627_s2 + $0x68] sm:$0xff] }
 0x152   : > { %3337 = vmatmul.mubr.msk.bf16.vlgmr.msra.gmra.mrb[0].mxu0 %vm498_vm1, %v3763_v49  ;;  %3268 = vmatprep.mubr.msk.bf16.mxu1 %vm498_vm1, %v3764_v50  ;;  %v2531_v49 = vld [vmem:[%s4627_s2 + $0x70] sm:$0xff]  ;;  %v2532_v50 = vld [vmem:[%s4627_s2 + $0x78] sm:$0xff]  ;;  %s412_s2 = scalar_lea.vmem [#allocation14], %s2861_s30 }
 0x153   : > { %3353 = vmatpush3.bf16.msra.mxu0 %v1883_v52  ;;  %3340 = vmatprep.mubr.msk.bf16.mxu0 %vm498_vm1, %v3765_v51 }
 0x154   : > { %3281 = vmatpush3.bf16.msra.mxu1 %v1077_v53  ;;  %3556 = vmatprep.subr.msk.bf16.mxu0 %vm523_vm0, %v2018_v54 }
 0x155   : > { %3388 = vmatprep.subr.bf16.mxu1 %v3800_v26  ;;  %2595 = vperm.xlu0 %3726, %v2529_v47  }
 0x156   : > { %2600 = vperm.xlu1 %3727, %v2530_v48  }
 0x159   : > { %3269 = vmatmul.mubr.msk.bf16.gmra.mrb[4].mxu1 %vm498_vm1, %v3766_v55  ;;  %2605 = vperm.xlu0 %3726, %v2531_v49  }
 0x15a   : > { %3341 = vmatmul.mubr.msk.bf16.gmra.mrb[4].mxu0 %vm498_vm1, %v3767_v56  ;;  %3272 = vmatprep.mubr.msk.bf16.mxu1 %vm498_vm1, %v3768_v57 }
 0x15b   : > { %3344 = vmatprep.mubr.msk.bf16.mxu0 %vm498_vm1, %v3769_v58  ;;  %2610 = vperm.xlu1 %3727, %v2532_v50  }
 0x161   : > { %3273 = vmatmul.mubr.msk.bf16.gmra.mrb[8].mxu1 %vm498_vm1, %v3770_v59 }
 0x162   : > { %3345 = vmatmul.mubr.msk.bf16.gmra.mrb[8].mxu0 %vm498_vm1, %v3771_v60  ;;  %3276 = vmatprep.mubr.msk.bf16.mxu1 %vm498_vm1, %v3772_v61 }
 0x163   : > { %3348 = vmatprep.mubr.msk.bf16.mxu0 %vm498_vm1, %v3773_v62 }
 0x169   : > { %3277 = vmatmul.mubr.msk.bf16.gmra.mrb[12].mxu1 %vm498_vm1, %v3774_v63 }
 0x16a   : > { %3349 = vmatmul.mubr.msk.bf16.gmra.mrb[12].mxu0 %vm498_vm1, %v3775_v0  ;;  %3282 = vmatprep.mubr.msk.bf16.mxu1 %vm498_vm1, %v3776_v1 }
 0x16b   : > { %3354 = vmatprep.mubr.msk.bf16.mxu0 %vm498_vm1, %v3777_v2 }
 0x171   : > { %3283 = vmatmul.mubr.msk.bf16.vlgmr.msra.gmra.mrb[0].mxu1 %vm498_vm1, %v3778_v3 }
 0x172   : > { %3355 = vmatmul.mubr.msk.bf16.vlgmr.msra.gmra.mrb[0].mxu0 %vm498_vm1, %v3779_v4  ;;  %3286 = vmatprep.mubr.msk.bf16.mxu1 %vm498_vm1, %v3780_v5  ;;  %v4851_v4 = vld [vmem:[#allocation10] ss:$0 sm:$0xff] }
 0x173   : > { %3371 = vmatpush3.bf16.msra.mxu0 %v2084_v7  ;;  %3358 = vmatprep.mubr.msk.bf16.mxu0 %vm498_vm1, %v3781_v6 }
 0x174   : > { %3389 = vmatpush3.bf16.msra.mxu1 %v3800_v26 }
 0x175   : > { %3390 = vmatprep.subr.bf16.mxu1 %v3801_v27 }
 0x178   : > { %3391 = vmatpush3.bf16.msra.mxu1 %v3801_v27 }
 0x179   : > { %3287 = vmatmul.mubr.msk.bf16.gmra.mrb[4].mxu1 %vm498_vm1, %v3782_v8  ;;  %3392 = vmatprep.subr.bf16.mxu1 %v3802_v28 }
 0x17a   : > { %3359 = vmatmul.mubr.msk.bf16.gmra.mrb[4].mxu0 %vm498_vm1, %v3783_v9  ;;  %3290 = vmatprep.mubr.msk.bf16.mxu1 %vm498_vm1, %v3784_v10 }
 0x17b   : > { %3362 = vmatprep.mubr.msk.bf16.mxu0 %vm498_vm1, %v3785_v11 }
 0x17c   : > { %3393 = vmatpush3.bf16.msra.mxu1 %v3802_v28 }
 0x17d   : > { %3394 = vmatprep.subr.bf16.mxu1 %v3803_v29 }
 0x180   : > { %3395 = vmatpush3.bf16.msra.mxu1 %v3803_v29 }
 0x181   : > { %3291 = vmatmul.mubr.msk.bf16.gmra.mrb[8].mxu1 %vm498_vm1, %v3786_v12  ;;  %3396 = vmatprep.subr.bf16.mxu1 %v3804_v30 }
 0x182   : > { %3363 = vmatmul.mubr.msk.bf16.gmra.mrb[8].mxu0 %vm498_vm1, %v3787_v13  ;;  %3294 = vmatprep.mubr.msk.bf16.mxu1 %vm498_vm1, %v3788_v14 }
 0x183   : > { %3366 = vmatprep.mubr.msk.bf16.mxu0 %vm498_vm1, %v3789_v15 }
 0x184   : > { %3397 = vmatpush3.bf16.msra.mxu1 %v3804_v30 }
 0x185   : > { %3398 = vmatprep.subr.bf16.mxu1 %v3805_v31 }
 0x188   : > { %3399 = vmatpush3.bf16.msra.mxu1 %v3805_v31 }
 0x189   : > { %3295 = vmatmul.mubr.msk.bf16.gmra.mrb[12].mxu1 %vm498_vm1, %v3790_v16  ;;  %3400 = vmatprep.subr.bf16.mxu1 %v3806_v32 }
 0x18a   : > { %3367 = vmatmul.mubr.msk.bf16.gmra.mrb[12].mxu0 %vm498_vm1, %v3791_v17 }
 0x18b   : > { %3372 = vmatprep.mubr.msk.bf16.mxu0 %vm498_vm1, %v3792_v18 }
 0x18c   : > { %3401 = vmatpush3.bf16.msra.mxu1 %v3806_v32 }
 0x18d   : > { %3402 = vmatprep.subr.bf16.mxu1 %v3807_v33 }
 0x190   : > { %3403 = vmatpush3.bf16.msra.mxu1 %v3807_v33 }
 0x192   : > { %3373 = vmatmul.mubr.msk.bf16.vlgmr.msra.gmra.mrb[0].mxu0 %vm498_vm1, %v3793_v19 }
 0x193   : > { %3376 = vmatprep.mubr.msk.bf16.mxu0 %vm498_vm1, %v3794_v20 }
 0x19a   : > { %3377 = vmatmul.mubr.msk.bf16.gmra.mrb[4].mxu0 %vm498_vm1, %v3795_v21 }
 0x19b   : > { %3380 = vmatprep.mubr.msk.bf16.mxu0 %vm498_vm1, %v3796_v22 }
 0x1a2   : > { %3381 = vmatmul.mubr.msk.bf16.gmra.mrb[8].mxu0 %vm498_vm1, %v3797_v23 }
 0x1a3   : > { %3384 = vmatprep.mubr.msk.bf16.mxu0 %vm498_vm1, %v3798_v24 }
 0x1aa   : > { %3385 = vmatmul.mubr.msk.bf16.gmra.mrb[12].mxu0 %vm498_vm1, %v3799_v25 }
 0x244   : > { %v3284_v51 = vpop.f32.mrb[0].mxu1 }
 0x245   : > { %v1113_v52 = vpop.f32.mrb[1].mxu1 }
 0x246   : > { %v3285_v53 = vpop.f32.mrb[2].mxu1 }
 0x247   : > { %v1116_v54 = vpop.f32.mrb[3].mxu1 }
 0x24c   : > { %v3288_v55 = vpop.f32.mrb[4].mxu1 }
 0x24d   : > { %v1129_v56 = vpop.f32.mrb[5].mxu1 }
 0x24e   : > { %v3289_v57 = vpop.f32.mrb[6].mxu1 }
 0x24f   : > { %v1132_v58 = vpop.f32.mrb[7].mxu1 }
 0x254   : > { %v3292_v59 = vpop.f32.mrb[8].mxu1 }
 0x255   : > { %v1145_v60 = vpop.f32.mrb[9].mxu1 }
 0x256   : > { %v3293_v61 = vpop.f32.mrb[10].mxu1 }
 0x257   : > { %v1148_v62 = vpop.f32.mrb[11].mxu1 }
 0x25c   : > { %v3296_v63 = vpop.f32.mrb[12].mxu1 }
 0x25d   : > { %v4845_v0 = vpop.f32.mrb[13].mxu1 }
 0x25e   : > { %v4847_v1 = vpop.f32.mrb[14].mxu1 }
 0x25f   : > { %v4849_v2 = vpop.f32.mrb[15].mxu1 }
 0x265   : > { %v3374_v3 = vpop.f32.mrb[0].mxu0 }
 0x266   : > { %v3420_v5 = vadd.f32 %v3374_v3, %v3284_v51  ;;  %v2120_v6 = vpop.f32.mrb[1].mxu0 }
 0x267   : > { %v3421_v7 = vadd.f32 %v2120_v6, %v1113_v52  ;;  %v3375_v8 = vpop.f32.mrb[2].mxu0 }
 0x268   : > { %v2208_v9 = vadd.f32 %v3420_v5, %v4851_v4  ;;  %v3422_v10 = vadd.f32 %v3375_v8, %v3285_v53  ;;  %v2123_v11 = vpop.f32.mrb[3].mxu0 }
 0x269   : > { %v2206_v12 = vadd.f32 %v3421_v7, %v4851_v4  ;;  %v3423_v13 = vadd.f32 %v2123_v11, %v1116_v54 }
 0x26a   : > { %v2209_v14 = vadd.f32 %v3422_v10, %v4851_v4  ;;  %v2224_v16 = vmax.f32 %v2208_v9, 0.0 }
 0x26b   : > { %v2207_v15 = vadd.f32 %v3423_v13, %v4851_v4  ;;  %v2222_v18 = vmax.f32 %v2206_v12, 0.0 }
 0x26c   : > { %v2225_v17 = vmax.f32 %v2209_v14, 0.0 }
 0x26d   : > { %v2223_v19 = vmax.f32 %v2207_v15, 0.0  ;;  %v3378_v20 = vpop.f32.mrb[4].mxu0 }
 0x26e   : > { %v2239_v21 = vpack.c.bf16 %v2225_v17, %v2224_v16  ;;  %v3424_v22 = vadd.f32 %v3378_v20, %v3288_v55  ;;  %v2136_v23 = vpop.f32.mrb[5].mxu0 }
 0x26f   : > { %v3425_v24 = vadd.f32 %v2136_v23, %v1129_v56  ;;  %v3379_v25 = vpop.f32.mrb[6].mxu0  ;;  %v2238_v26 = vpack.c.bf16 %v2223_v19, %v2222_v18 }
 0x270   : > { %v2212_v27 = vadd.f32 %v3424_v22, %v4851_v4  ;;  %v3426_v28 = vadd.f32 %v3379_v25, %v3289_v57  ;;  %v2139_v29 = vpop.f32.mrb[7].mxu0 }
 0x271   : > { %v2210_v30 = vadd.f32 %v3425_v24, %v4851_v4  ;;  %v3427_v31 = vadd.f32 %v2139_v29, %v1132_v58  ;;  %3404 = vmatprep.mubr.bf16.mxu1 %v2238_v26 }
 0x272   : > { %v2213_v32 = vadd.f32 %v3426_v28, %v4851_v4  ;;  %3405 = vmatmul.mubr.bf16.vlgmr.msra.gmra.mrb[16].mxu1 %v2239_v21  ;;  %v2228_v34 = vmax.f32 %v2212_v27, 0.0 }
 0x273   : > { %v2211_v33 = vadd.f32 %v3427_v31, %v4851_v4  ;;  %v2226_v36 = vmax.f32 %v2210_v30, 0.0 }
 0x274   : > { %v2229_v35 = vmax.f32 %v2213_v32, 0.0 }
 0x275   : > { %v2227_v37 = vmax.f32 %v2211_v33, 0.0  ;;  %v3382_v38 = vpop.f32.mrb[8].mxu0 }
 0x276   : > { %v3428_v39 = vadd.f32 %v3382_v38, %v3292_v59  ;;  %v2152_v40 = vpop.f32.mrb[9].mxu0  ;;  %v2241_v41 = vpack.c.bf16 %v2229_v35, %v2228_v34  ;;  %v4882_v38 = vld [vmem:[#allocation2] ss:$0 sm:$0xff] }
 0x277   : > { %v3429_v42 = vadd.f32 %v2152_v40, %v1145_v60  ;;  %v3383_v43 = vpop.f32.mrb[10].mxu0  ;;  %v2240_v44 = vpack.c.bf16 %v2227_v37, %v2226_v36 }
 0x278   : > { %v2216_v45 = vadd.f32 %v3428_v39, %v4851_v4  ;;  %v3430_v46 = vadd.f32 %v3383_v43, %v3293_v61  ;;  %v2155_v47 = vpop.f32.mrb[11].mxu0 }
 0x279   : > { %v2214_v48 = vadd.f32 %v3429_v42, %v4851_v4  ;;  %v3431_v49 = vadd.f32 %v2155_v47, %v1148_v62  ;;  %3408 = vmatprep.mubr.bf16.mxu1 %v2240_v44 }
 0x27a   : > { %v2217_v50 = vadd.f32 %v3430_v46, %v4851_v4  ;;  %3409 = vmatmul.mubr.bf16.gmra.mrb[20].mxu1 %v2241_v41  ;;  %v2232_v52 = vmax.f32 %v2216_v45, 0.0 }
 0x27b   : > { %v2215_v51 = vadd.f32 %v3431_v49, %v4851_v4  ;;  %v2230_v54 = vmax.f32 %v2214_v48, 0.0 }
 0x27c   : > { %v2233_v53 = vmax.f32 %v2217_v50, 0.0 }
 0x27d   : > { %v2231_v55 = vmax.f32 %v2215_v51, 0.0  ;;  %v3386_v56 = vpop.f32.mrb[12].mxu0 }
 0x27e   : > { %v3432_v57 = vadd.f32 %v3386_v56, %v3296_v63  ;;  %v2168_v58 = vpop.f32.mrb[13].mxu0  ;;  %v2243_v59 = vpack.c.bf16 %v2233_v53, %v2232_v52 }
 0x27f   : > { %v3433_v60 = vadd.f32 %v2168_v58, %v4845_v0  ;;  %v3387_v61 = vpop.f32.mrb[14].mxu0  ;;  %v2242_v3 = vpack.c.bf16 %v2231_v55, %v2230_v54 }
 0x280   : > { %v2220_v62 = vadd.f32 %v3432_v57, %v4851_v4  ;;  %v3434_v5 = vadd.f32 %v3387_v61, %v4847_v1  ;;  %v2171_v6 = vpop.f32.mrb[15].mxu0  ;;  %v4872_v1 = vld [vmem:[#allocation13] ss:$0 sm:$0xff] }
 0x281   : > { %v2218_v7 = vadd.f32 %v3433_v60, %v4851_v4  ;;  %v3435_v8 = vadd.f32 %v2171_v6, %v4849_v2  ;;  %3412 = vmatprep.mubr.bf16.mxu1 %v2242_v3  ;;  %v2536_v6 = vpop.permute.xlu0 %2535 }
 0x282   : > { %v2221_v9 = vadd.f32 %v3434_v5, %v4851_v4  ;;  %3413 = vmatmul.mubr.bf16.gmra.mrb[24].mxu1 %v2243_v59  ;;  %v2236_v10 = vmax.f32 %v2220_v62, 0.0 }
 0x283   : > { %v2219_v63 = vadd.f32 %v3435_v8, %v4851_v4  ;;  %v2234_v0 = vmax.f32 %v2218_v7, 0.0 }
 0x284   : > { %v2237_v11 = vmax.f32 %v2221_v9, 0.0 }
 0x285   : > { %v2235_v12 = vmax.f32 %v2219_v63, 0.0 }
 0x286   : > { %v2245_v13 = vpack.c.bf16 %v2237_v11, %v2236_v10 }
 0x287   : > { %v2244_v14 = vpack.c.bf16 %v2235_v12, %v2234_v0  ;;  %v2546_v0 = vpop.permute.xlu1 %2545 }
 0x289   : > { %3416 = vmatprep.mubr.bf16.mxu1 %v2244_v14 }
 0x28a   : > { %3417 = vmatmul.mubr.bf16.gmra.mrb[28].mxu1 %v2245_v13 }
 0x345   : > { %v3406_v15 = vpop.f32.mrb[16].mxu1 }
 0x346   : > { %v2360_v16 = vadd.f32 %v3406_v15, %v4872_v1  ;;  %v2351_v2 = vpop.f32.mrb[17].mxu1 }
 0x347   : > { %v2352_v17 = vadd.f32 %v4872_v1, %v2351_v2  ;;  %v3407_v18 = vpop.f32.mrb[18].mxu1 }
 0x348   : > { %v2417_v19 = vmax.f32 %v2360_v16, 1e-06  ;;  %v2363_v4 = vadd.f32 %v3407_v18, %v4872_v1  ;;  %v2354_v20 = vpop.f32.mrb[19].mxu1 }
 0x349   : > { %v2415_v21 = vmax.f32 %v2352_v17, 1e-06  ;;  %v2355_v22 = vadd.f32 %v4872_v1, %v2354_v20 }
 0x34a   : > { %3808 = vlog2.f32 %v2417_v19  ;;  %v2418_v23 = vmax.f32 %v2363_v4, 1e-06 }
 0x34b   : > { %3810 = vlog2.f32 %v2415_v21  ;;  %v2416_v24 = vmax.f32 %v2355_v22, 1e-06 }
 0x34c   : > { %3812 = vlog2.f32 %v2418_v23 }
 0x34d   : > { %3814 = vlog2.f32 %v2416_v24  ;;  %v3410_v25 = vpop.f32.mrb[20].mxu1  ;;  %v2541_v24 = vpop.permute.xlu0 %2540 }
 0x34e   : > { %v2376_v26 = vadd.f32 %v3410_v25, %v4872_v1  ;;  %v2367_v27 = vpop.f32.mrb[21].mxu1 }
 0x34f   : > { %v2368_v28 = vadd.f32 %v4872_v1, %v2367_v27  ;;  %v3411_v29 = vpop.f32.mrb[22].mxu1 }
 0x350   : > { %v2421_v30 = vmax.f32 %v2376_v26, 1e-06  ;;  %v2379_v31 = vadd.f32 %v3411_v29, %v4872_v1  ;;  %v2370_v32 = vpop.f32.mrb[23].mxu1 }
 0x351   : > { %v2419_v33 = vmax.f32 %v2368_v28, 1e-06  ;;  %v2371_v34 = vadd.f32 %v4872_v1, %v2370_v32 }
 0x352   : > { %3816 = vlog2.f32 %v2421_v30  ;;  %v2422_v35 = vmax.f32 %v2379_v31, 1e-06 }
 0x353   : > { %3818 = vlog2.f32 %v2419_v33  ;;  %v2420_v36 = vmax.f32 %v2371_v34, 1e-06  ;;  %v2551_v33 = vpop.permute.xlu1 %2550 }
 0x354   : > { %v3809_v37 = vpop.eup %3808  ;;  %3820 = vlog2.f32 %v2422_v35 }
 0x355   : > { %v3811_v39 = vpop.eup %3810  ;;  %v2436_v40 = vmul.f32 0.6931472, %v3809_v37  ;;  %3822 = vlog2.f32 %v2420_v36  ;;  %v3414_v41 = vpop.f32.mrb[24].mxu1 }
 0x356   : > { %v3813_v42 = vpop.eup %3812  ;;  %v2432_v43 = vmul.f32 0.6931472, %v3811_v39  ;;  %v2392_v44 = vadd.f32 %v3414_v41, %v4872_v1  ;;  %v2383_v45 = vpop.f32.mrb[25].mxu1 }
 0x357   : > { %v3815_v46 = vpop.eup %3814  ;;  %v2471_v47 = vmul.f32 %v4882_v38, %v2436_v40  ;;  %v2438_v48 = vmul.f32 0.6931472, %v3813_v42  ;;  %v2384_v49 = vadd.f32 %v4872_v1, %v2383_v45  ;;  %v3415_v50 = vpop.f32.mrb[26].mxu1 }
 0x358   : > { %v2469_v51 = vmul.f32 %v4882_v38, %v2432_v43  ;;  %v2434_v52 = vmul.f32 0.6931472, %v3815_v46  ;;  %v2425_v53 = vmax.f32 %v2392_v44, 1e-06  ;;  %v2395_v54 = vadd.f32 %v3415_v50, %v4872_v1  ;;  %v2386_v55 = vpop.f32.mrb[27].mxu1  ;;  %v2556_v42 = vpop.permute.xlu0 %2555 }
 0x359   : > { %v2489_v56 = vmul.f32 1.442695, %v2471_v47  ;;  %v2472_v57 = vmul.f32 %v4882_v38, %v2438_v48  ;;  %v2387_v58 = vadd.f32 %v4872_v1, %v2386_v55  ;;  %v2423_v3 = vmax.f32 %v2384_v49, 1e-06  ;;  %v2561_v47 = vpop.permute.xlu1 %2560 }
 0x35a   : > { %v2485_v59 = vmul.f32 1.442695, %v2469_v51  ;;  %v2470_v60 = vmul.f32 %v4882_v38, %v2434_v52  ;;  %3824 = vlog2.f32 %v2425_v53  ;;  %v2426_v7 = vmax.f32 %v2395_v54, 1e-06 }
 0x35b   : > { %3826 = vpow2.f32 %v2489_v56  ;;  %v2491_v61 = vmul.f32 1.442695, %v2472_v57  ;;  %v2424_v63 = vmax.f32 %v2387_v58, 1e-06 }
 0x35c   : > { %v3817_v62 = vpop.eup %3816  ;;  %3828 = vpow2.f32 %v2485_v59  ;;  %v2487_v5 = vmul.f32 1.442695, %v2470_v60 }
 0x35d   : > { %v3819_v8 = vpop.eup %3818  ;;  %3830 = vpow2.f32 %v2491_v61  ;;  %v2444_v9 = vmul.f32 0.6931472, %v3817_v62  ;;  %v3418_v10 = vpop.f32.mrb[28].mxu1 }
 0x35e   : > { %v3821_v11 = vpop.eup %3820  ;;  %3832 = vpow2.f32 %v2487_v5  ;;  %v2440_v12 = vmul.f32 0.6931472, %v3819_v8  ;;  %v2408_v13 = vadd.f32 %v3418_v10, %v4872_v1  ;;  %v2399_v14 = vpop.f32.mrb[29].mxu1 }
 0x35f   : > { %v3823_v15 = vpop.eup %3822  ;;  %v2475_v16 = vmul.f32 %v4882_v38, %v2444_v9  ;;  %v2446_v2 = vmul.f32 0.6931472, %v3821_v11  ;;  %3834 = vlog2.f32 %v2423_v3  ;;  %v2400_v17 = vadd.f32 %v4872_v1, %v2399_v14  ;;  %v3419_v18 = vpop.f32.mrb[30].mxu1 }
 0x360   : > { %v2473_v19 = vmul.f32 %v4882_v38, %v2440_v12  ;;  %v2442_v4 = vmul.f32 0.6931472, %v3823_v15  ;;  %3836 = vlog2.f32 %v2426_v7  ;;  %v2429_v20 = vmax.f32 %v2408_v13, 1e-06  ;;  %v2402_v21 = vpop.f32.mrb[31].mxu1  ;;  %v2566_v62 = vpop.permute.xlu0 %2565 }
 0x361   : > { %v2497_v22 = vmul.f32 1.442695, %v2475_v16  ;;  %v2476_v23 = vmul.f32 %v4882_v38, %v2446_v2  ;;  %3838 = vlog2.f32 %v2424_v63  ;;  %v2411_v27 = vadd.f32 %v3419_v18, %v4872_v1 }
 0x362   : > { %v2493_v25 = vmul.f32 1.442695, %v2473_v19  ;;  %v2474_v26 = vmul.f32 %v4882_v38, %v2442_v4  ;;  %3840 = vlog2.f32 %v2429_v20  ;;  %v2427_v29 = vmax.f32 %v2400_v17, 1e-06 }
 0x363   : > { %3842 = vpow2.f32 %v2497_v22  ;;  %v2499_v28 = vmul.f32 1.442695, %v2476_v23  ;;  %v2403_v30 = vadd.f32 %v4872_v1, %v2402_v21  ;;  %v2430_v34 = vmax.f32 %v2411_v27, 1e-06 }
 0x364   : > { %v3825_v31 = vpop.eup %3824  ;;  %3844 = vpow2.f32 %v2493_v25  ;;  %v2495_v32 = vmul.f32 1.442695, %v2474_v26  ;;  %v2576_v20 = vpop.permute.xlu0 %2575 }
 0x365   : > { %v3827_v35 = vpop.eup %3826  ;;  %3846 = vpow2.f32 %v2499_v28  ;;  %v2452_v36 = vmul.f32 0.6931472, %v3825_v31  ;;  %v2428_v37 = vmax.f32 %v2403_v30, 1e-06 }
 0x366   : > { %v3829_v39 = vpop.eup %3828  ;;  %3848 = vpow2.f32 %v2495_v32  ;;  %v2615_v50 = vmul.f32 %v3827_v35, %v2546_v0  ;;  %v2571_v0 = vpop.permute.xlu1 %2570 }
 0x367   : > { %v3831_v40 = vpop.eup %3830  ;;  %3850 = vlog2.f32 %v2427_v29  ;;  %v2613_v44 = vmul.f32 %v3829_v39, %v2536_v6  ;;  %v2479_v1 = vmul.f32 %v4882_v38, %v2452_v36 }
 0x368   : > { %v3833_v41 = vpop.eup %3832  ;;  %3852 = vlog2.f32 %v2430_v34  ;;  %v2616_v54 = vmul.f32 %v3831_v40, %v2551_v33  ;;  %v2586_v34 = vpop.permute.xlu0 %2585 }
 0x369   : > { %v3835_v43 = vpop.eup %3834  ;;  %v2614_v45 = vmul.f32 %v3833_v41, %v2541_v24  ;;  %3854 = vlog2.f32 %v2428_v37  ;;  %v2505_v59 = vmul.f32 1.442695, %v2479_v1 }
 0x36a   : > { %v3837_v46 = vpop.eup %3836  ;;  %v2448_v48 = vmul.f32 0.6931472, %v3835_v43  ;;  %v2581_v27 = vpop.permute.xlu1 %2580 }
 0x36b   : > { %v3839_v49 = vpop.eup %3838  ;;  %v2629_v51 = vadd.f32 %v2614_v45, %v2613_v44  ;;  %v2454_v52 = vmul.f32 0.6931472, %v3837_v46 }
 0x36c   : > { %v3841_v53 = vpop.eup %3840  ;;  %v2477_v55 = vmul.f32 %v4882_v38, %v2448_v48  ;;  %v2450_v56 = vmul.f32 0.6931472, %v3839_v49  ;;  %v2596_v45 = vpop.permute.xlu0 %2595 }
 0x36d   : > { %v3843_v57 = vpop.eup %3842  ;;  %v2630_v58 = vadd.f32 %v2629_v51, %v2615_v50  ;;  %v2480_v60 = vmul.f32 %v4882_v38, %v2454_v52  ;;  %v2460_v61 = vmul.f32 0.6931472, %v3841_v53 }
 0x36e   : > { %v3845_v3 = vpop.eup %3844  ;;  %v2501_v5 = vmul.f32 1.442695, %v2477_v55  ;;  %v2478_v6 = vmul.f32 %v4882_v38, %v2450_v56  ;;  %v2619_v19 = vmul.f32 %v3843_v57, %v2566_v62  ;;  %v2591_v39 = vpop.permute.xlu1 %2590 }
 0x36f   : > { %v3847_v7 = vpop.eup %3846  ;;  %v2631_v8 = vadd.f32 %v2630_v58, %v2616_v54  ;;  %v2617_v9 = vmul.f32 %v3845_v3, %v2556_v42  ;;  %v2507_v10 = vmul.f32 1.442695, %v2480_v60  ;;  %v2483_v15 = vmul.f32 %v4882_v38, %v2460_v61 }
 0x370   : > { %v3849_v63 = vpop.eup %3848  ;;  %3856 = vpow2.f32 %v2501_v5  ;;  %v2503_v11 = vmul.f32 1.442695, %v2478_v6  ;;  %v2620_v24 = vmul.f32 %v3847_v7, %v2571_v0  ;;  %v2606_v55 = vpop.permute.xlu0 %2605  ;;  %v4226_v3 = vmov (!%p3123_p8), 0.0  }
 0x371   : > { %v3851_v12 = vpop.eup %3850  ;;  %v2632_v13 = vadd.f32 %v2631_v8, %v2617_v9  ;;  %v2618_v14 = vmul.f32 %v3849_v63, %v2561_v47  ;;  %3858 = vpow2.f32 %v2505_v59  ;;  %v2513_v25 = vmul.f32 1.442695, %v2483_v15  ;;  %2648 = vst [vmem:[%s412_s2] sm:$0xff] (!%p3123_p8), %v4226_v3 }
 0x372   : > { %v3853_v16 = vpop.eup %3852  ;;  %3860 = vpow2.f32 %v2503_v11  ;;  %v2456_v2 = vmul.f32 0.6931472, %v3851_v12  ;;  %v2601_v47 = vpop.permute.xlu1 %2600 }
 0x373   : > { %v3855_v17 = vpop.eup %3854  ;;  %v2633_v18 = vadd.f32 %v2632_v13, %v2618_v14  ;;  %v2462_v4 = vmul.f32 0.6931472, %v3853_v16  ;;  %3862 = vpow2.f32 %v2507_v10 }
 0x374   : > { %v2481_v21 = vmul.f32 %v4882_v38, %v2456_v2  ;;  %v2458_v22 = vmul.f32 0.6931472, %v3855_v17 }
 0x375   : > { %v2634_v23 = vadd.f32 %v2633_v18, %v2619_v19  ;;  %v2484_v26 = vmul.f32 %v4882_v38, %v2462_v4 }
 0x376   : > { %v2509_v28 = vmul.f32 1.442695, %v2481_v21  ;;  %v2482_v29 = vmul.f32 %v4882_v38, %v2458_v22  ;;  %v2611_v58 = vpop.permute.xlu1 %2610 }
 0x377   : > { %v2635_v30 = vadd.f32 %v2634_v23, %v2620_v24  ;;  %v2515_v31 = vmul.f32 1.442695, %v2484_v26 }
 0x378   : > { %3864 = vpow2.f32 %v2509_v28  ;;  %v2511_v32 = vmul.f32 1.442695, %v2482_v29 }
 0x379   : > { %3866 = vpow2.f32 %v2513_v25 }
 0x37a   : > { %v3857_v33 = vpop.eup %3856  ;;  %3868 = vpow2.f32 %v2511_v32 }
 0x37b   : > { %v3859_v35 = vpop.eup %3858  ;;  %v2621_v36 = vmul.f32 %v3857_v33, %v2576_v20  ;;  %3870 = vpow2.f32 %v2515_v31 }
 0x37c   : > { %v3861_v37 = vpop.eup %3860  ;;  %v2623_v44 = vmul.f32 %v3859_v35, %v2586_v34 }
 0x37d   : > { %v2636_v40 = vadd.f32 %v2635_v30, %v2621_v36  ;;  %v2622_v41 = vmul.f32 %v3861_v37, %v2581_v27  ;;  %v3863_v42 = vpop.eup %3862 }
 0x37e   : > { %v2624_v1 = vmul.f32 %v3863_v42, %v2591_v39 }
 0x37f   : > { %v2637_v43 = vadd.f32 %v2636_v40, %v2622_v41 }
 0x381   : > { %v2638_v38 = vadd.f32 %v2637_v43, %v2623_v44 }
 0x382   : > { %v3865_v46 = vpop.eup %3864 }
 0x383   : > { %v3867_v48 = vpop.eup %3866  ;;  %v2639_v49 = vadd.f32 %v2638_v38, %v2624_v1  ;;  %v2625_v50 = vmul.f32 %v3865_v46, %v2596_v45 }
 0x384   : > { %v3869_v51 = vpop.eup %3868  ;;  %v2627_v57 = vmul.f32 %v3867_v48, %v2606_v55 }
 0x385   : > { %v2640_v52 = vadd.f32 %v2639_v49, %v2625_v50  ;;  %v2626_v53 = vmul.f32 %v3869_v51, %v2601_v47  ;;  %v3871_v54 = vpop.eup %3870  ;;  %2647 = sbr.rel (%p3123_p8) target bundleno = 908 (0x38c), region = 80 }
 0x386   : > { %v2628_v60 = vmul.f32 %v3871_v54, %v2611_v58 }
 0x387   : > { %v2641_v56 = vadd.f32 %v2640_v52, %v2626_v53 }
 0x389   : > { %v2642_v59 = vadd.f32 %v2641_v56, %v2627_v57 }
 0x38b   : > { %v2643_v61 = vadd.f32 %v2642_v59, %v2628_v60 }
 0x38c PF: > { %v2649_v62 = vld [vmem:[%s412_s2] sm:$0xff]  ;;  %s5045_s12 = sld [smem:[#allocation22_spill]]  ;;  %s5046_s23 = sld [smem:[#allocation30_spill]] }
 0x38d   : > { %v2650_v5 = vadd.f32 %v2649_v62, %v2643_v61  ;;  %s2666_s8 = sshll.u32 %s412_s2, 4  ;;  %s2653_s17 = scalar_lea.sflag [#allocation4], %s4634_s7  ;;  %s4917_s8 = int_to_ptr.vmem [resolvable:$true] %s2666_s8 }
 0x38e   : > { %s4072_s30 = scalar_lea.vmem %s4917_s8, 128  ;;  %p5047_p11 = scmp.ne.s32.totalorder %s5028_s21, 0 }
 0x38f   : > { %2651 = vst [vmem:[%s412_s2] sm:$0xff] %v2650_v5  ;;  %p4073_p3 = scmp.ne.s32.totalorder %s4917_s8, %s4072_s30  ;;  %s4227_s5 = smov [#allocation14]  }
 0x390   : > { %s4076_s15 = sshll.u32 %s4227_s5, 4  ;;  %s4077_s15 = int_to_ptr.vmem [resolvable:$false] %s4076_s15 }
 0x391   : > { %p4074_p4 = pnand %p4073_p3, %p5047_p11  ;;  %s4078_s9 = scalar_lea.vmem %s4077_s15, 256 }
 0x392   : > { %s3125_s13 = sshll.u32 %s5045_s12, 7  ;;  %p4079_p12 = scmp.lt.s32.totalorder %s4917_s8, %s4077_s15 }
 0x393   : > { %s4915_s14 = scalar_lea.hbm %s5046_s23, %s3125_s13  ;;  %p4075_p9 = pneg %p4074_p4 }
 0x394   : > { %p4080_p5 = scmp.lt.s32.totalorder %s4078_s9, %s4072_s30 }
 0x396   : > { %p4081_p13 = por %p4080_p5, %p4079_p12 }
 0x398   : > { %p4082_p10 = pnand %p4081_p13, %p4075_p9 }
 0x39a   : > { %4085 = shalt.err (!%p4082_p10)
}
 0x39b   : > { %s4086_s7 = scalar_lea.hbm %s4915_s14, 128  ;;  %s4090_s12 = scalar_lea.hbm %s5046_s23, 256 }
 0x39c   : > { %p4087_p1 = scmp.ne.s32.totalorder %s4915_s14, %s4086_s7  ;;  %p4091_p0 = scmp.lt.u32.totalorder %s4915_s14, %s5046_s23 }
 0x39d   : > { %p4092_p2 = scmp.lt.u32.totalorder %s4090_s12, %s4086_s7  ;;  %p4094_p3 = scmp.lt.u32.totalorder %s4086_s7, %s4915_s14 }
 0x39e   : > { %p4088_p6 = pnand %p4087_p1, %p5047_p11 }
 0x39f   : > { %p4093_p8 = por %p4092_p2, %p4091_p0 }
 0x3a0   : > { %p4089_p7 = pneg %p4088_p6 }
 0x3a1   : > { %p4095_p4 = por %p4094_p3, %p4093_p8 }
 0x3a3   : > { %p4096_p9 = pnand %p4095_p4, %p4089_p7 }
 0x3a5   : > { %4099 = shalt.err (!%p4096_p9)
}
 0x3a6   : > { %3584 = dma.vmem_to_hbm [thread:$0]  (%p5047_p11), %s4917_s8, 128, %s4915_s14, %s2653_s17  }
 0x3a7 PF: > { %p3624_p12 = scmp.ge.s32.totalorder %s4210_s11, 2  ;;  %s2678_s16 = sand.u32 1, %s4170_s24  }
 0x3a8   : > { %p5048_p5 = scmp.ne.s32.totalorder %s5029_s27, 0  ;;  %s2679_s30 = scalar_lea.sflag [#allocation4], %s2678_s16 }
 0x3aa   : > { %p3610_p13 = pnand %p3624_p12, %p5048_p5 }
 0x3ac   : > { %4165 = dma.done.wait (!%p3610_p13), %s2679_s30, 128  }
 0x3ad   : > { %4167 = vsyncadd (!%p3610_p13), %s2679_s30, 4294967168  ;;  %s26_s11 = sadd.s32 1, %s4210_s11   ;;  %s5049_s30 = sld [smem:[#allocation23_spill]] }
 0x3ae   : > { %p23_p10 = scmp.ge.s32.totalorder %s26_s11, 10   ;;  %s5050_s9 = sld [smem:[#allocation25_spill]] }
 0x3af   : > { %s5051_s24 = smov %s4174_s25  ;;  %s5052_s25 = smov %s4178_s26 }
 0x3b0   : > { %s5053_s26 = smov %s4580_s3  ;;  %s5054_s27 = smov %s4186_s28 }
 0x3b1   : > { %s5055_s28 = smov %s4190_s29  ;;  %s5056_s29 = smov %s4433_s19 }
 0x3b2   : > { %s5057_s8 = smov %s4206_s10  ;;  %s5058_s10 = smov %s5064_s18 }
 0x3b3   :  { %25 = sbr.rel (!%p23_p10) target bundleno = 18 (0x12), region = 146 }
 0x3ba   :  { %2684 = vsyncpa [#allocation3], 1 }
 0x3bb   :  { %2686 = vsyncpa [#allocation3 + $0x1], 1 }
 0x3bc   :  { %2687 = vsyncpa [#allocation6], 1 }
 0x3bd   :  { %2689 = vsyncpa [#allocation6 + $0x1], 1 }
 0x3be   :  { %2690 = vsyncpa [#allocation9], 1 }
 0x3bf   :  { %2691 = vsyncpa [#allocation12], 1 }
 0x3c0   :  { %2692 = vsyncpa [#allocation4], 1 }
 0x3c1   :  { %2694 = vsyncpa [#allocation4 + $0x1], 1 }

</bundles_post_ra>
